<compile_context>
chip_gen: v7x
topology: tpu7x:2x2x1
jax: 0.10.0
libtpu: 0.0.40
codegen_flags: <defaults>
</compile_context>

<pallas_src>
import math
import functools

import jax
import jax.numpy as jnp
from jax.experimental import pallas as pl
from jax.experimental.pallas import tpu as pltpu

MM_DTYPE = jnp.bfloat16   # MXU input dtype; accumulation is always f32.


# ---------------------------------------------------------------------------
# In-kernel helpers (f32 math)
# ---------------------------------------------------------------------------
def _new_gelu(x):
    # 0.5 * x * (1 + tanh(sqrt(2/pi) * (x + 0.044715 * x^3)))
    c = math.sqrt(2.0 / math.pi)
    return 0.5 * x * (1.0 + jnp.tanh(c * (x + 0.044715 * x * x * x)))


def _layernorm(x, gamma, beta, eps=1e-5):
    mu = jnp.mean(x, axis=-1, keepdims=True)
    var = jnp.mean((x - mu) ** 2, axis=-1, keepdims=True)
    return (x - mu) * jax.lax.rsqrt(var + eps) * gamma + beta


# ---------------------------------------------------------------------------
# Fused encoder kernel: one grid step = (one batch element, one layer).
# ---------------------------------------------------------------------------
def encoder_kernel(x_ref,
                   ln1_g_ref, ln1_b_ref,
                   wqkv_ref, bqkv_ref,
                   wo_ref, bo_ref,
                   ln2_g_ref, ln2_b_ref,
                   w1_ref, b1_ref, w2_ref, b2_ref,
                   o_ref,
                   carry_ref,
                   *, num_heads):
    layer = pl.program_id(1)
    num_layers = pl.num_programs(1)

    # Load the input activation into the resident carry at the first layer.
    @pl.when(layer == 0)
    def _():
        carry_ref[...] = x_ref[...].astype(jnp.float32)

    x = carry_ref[...]                      # (S, H) f32, resident across layers
    S, H = x.shape
    dh = H // num_heads

    # ---- attention branch: LN -> fused QKV -> batched-head MHA -> residual --
    h = _layernorm(x, ln1_g_ref[...], ln1_b_ref[...])          # f32 stats
    qkv = jnp.dot(h.astype(MM_DTYPE), wqkv_ref[...],
                  preferred_element_type=jnp.float32) + bqkv_ref[...]
    q = qkv[:, :H]
    k = qkv[:, H:2 * H]
    v = qkv[:, 2 * H:]

    # Batched heads: one reshape/transpose each instead of per-head slices.
    qh = q.reshape(S, num_heads, dh).transpose(1, 0, 2)          # (nh, S, dh)
    kh = k.reshape(S, num_heads, dh).transpose(1, 0, 2)
    vh = v.reshape(S, num_heads, dh).transpose(1, 0, 2)

    scale = 1.0 / math.sqrt(dh)
    s = jnp.einsum('hqd,hkd->hqk', qh.astype(MM_DTYPE), kh.astype(MM_DTYPE),
                   preferred_element_type=jnp.float32) * scale
    s = s - jnp.max(s, axis=-1, keepdims=True)                   # f32 softmax
    e = jnp.exp(s)
    p = e * pl.reciprocal(jnp.sum(e, axis=-1, keepdims=True), approx=True)
    # TODO(synk): for large S replace this materialized (nh,S,S) softmax with a
    # flash-style online-softmax KV loop to bound VMEM scratch.
    ctx = jnp.einsum('hqk,hkd->hqd', p.astype(MM_DTYPE), vh.astype(MM_DTYPE),
                     preferred_element_type=jnp.float32)
    attn = ctx.transpose(1, 0, 2).reshape(S, H)                  # (S, H)
    attn = jnp.dot(attn.astype(MM_DTYPE), wo_ref[...],
                   preferred_element_type=jnp.float32) + bo_ref[...]
    # Dropout (attention / output) is identity in eval mode.
    x = x + attn

    # ---- MLP branch: LN -> dense1 -> NewGELU -> dense2 -> residual ----------
    h2 = _layernorm(x, ln2_g_ref[...], ln2_b_ref[...])
    m = jnp.dot(h2.astype(MM_DTYPE), w1_ref[...],
                preferred_element_type=jnp.float32) + b1_ref[...]
    m = _new_gelu(m)                                             # f32 GELU
    m = jnp.dot(m.astype(MM_DTYPE), w2_ref[...],
                preferred_element_type=jnp.float32) + b2_ref[...]
    x = x + m

    carry_ref[...] = x

    # Write the output only after the last layer for this batch element.
    @pl.when(layer == num_layers - 1)
    def _():
        o_ref[...] = x.astype(o_ref.dtype)
    # TODO(synk): at realistic sizes pick H as a multiple of 128 (lane-dense
    # stores) and tile the token dim; at H=32 the store is a masked vst.


# ---------------------------------------------------------------------------
# Wrapper: one pallas_call for the whole encoder.
# ---------------------------------------------------------------------------
def encoder_forward(x, params, num_heads):
    (ln1_g, ln1_b, wqkv, bqkv, wo, bo,
     ln2_g, ln2_b, w1, b1, w2, b2) = params
    B, S, H = x.shape
    L = wqkv.shape[0]
    I = w1.shape[-1]

    def x_map(b, l):
        return (b, 0, 0)

    def w_map(b, l):
        return (l, 0, 0)

    def w_spec(arr):
        # Squeeze the layer dim; stream the (l)-th slice each grid step.
        return pl.BlockSpec((None,) + arr.shape[1:], w_map)

    in_specs = [pl.BlockSpec((None, S, H), x_map)] + [w_spec(a) for a in params]
    out_specs = pl.BlockSpec((None, S, H), x_map)

    # Advisory cost estimate for XLA scheduling around the custom call.
    flops = int(L * B * (2 * S * H * 3 * H        # fused QKV projection
                         + 4 * S * S * H          # scores + context
                         + 2 * S * H * H          # output projection
                         + 4 * S * H * I))        # MLP dense1 + dense2
    transcendentals = int(L * B * (num_heads * S * S + S * I))
    w_bytes = sum(int(a.size) * a.dtype.itemsize for a in params)
    bytes_accessed = int(B * w_bytes + 2 * B * S * H * x.dtype.itemsize)

    return pl.pallas_call(
        functools.partial(encoder_kernel, num_heads=num_heads),
        out_shape=jax.ShapeDtypeStruct((B, S, H), x.dtype),
        grid_spec=pltpu.PrefetchScalarGridSpec(
            num_scalar_prefetch=0,
            grid=(B, L),                               # batch outer, layer inner
            in_specs=in_specs,
            out_specs=out_specs,
            scratch_shapes=[pltpu.VMEM((S, H), jnp.float32)],   # activation carry
        ),
        compiler_params=pltpu.CompilerParams(
            dimension_semantics=("parallel", "arbitrary")),
        cost_estimate=pl.CostEstimate(flops=flops,
                                      transcendentals=transcendentals,
                                      bytes_accessed=bytes_accessed),
    )(x, *params)


# ---------------------------------------------------------------------------
# Deterministic parameter init (shapes consistent with the PyTorch module,
# with QKV fused and per-layer weights stacked along a leading layer dim).
# ---------------------------------------------------------------------------
def init_encoder_params(key, num_layers, hidden_size, intermediate_size):
    L, H, I = num_layers, hidden_size, intermediate_size
    s = 0.02
    f32 = jnp.float32
    ks = jax.random.split(key, 8)

    ln1_g = jnp.ones((L, 1, H), f32)
    ln1_b = jnp.zeros((L, 1, H), f32)
    wqkv = (jax.random.normal(ks[0], (L, H, 3 * H), f32) * s).astype(MM_DTYPE)
    bqkv = jax.random.normal(ks[1], (L, 1, 3 * H), f32) * s
    wo = (jax.random.normal(ks[2], (L, H, H), f32) * s).astype(MM_DTYPE)
    bo = jax.random.normal(ks[3], (L, 1, H), f32) * s
    ln2_g = jnp.ones((L, 1, H), f32)
    ln2_b = jnp.zeros((L, 1, H), f32)
    w1 = (jax.random.normal(ks[4], (L, H, I), f32) * s).astype(MM_DTYPE)
    b1 = jax.random.normal(ks[5], (L, 1, I), f32) * s
    w2 = (jax.random.normal(ks[6], (L, I, H), f32) * s).astype(MM_DTYPE)
    b2 = jax.random.normal(ks[7], (L, 1, H), f32) * s

    return (ln1_g, ln1_b, wqkv, bqkv, wo, bo,
            ln2_g, ln2_b, w1, b1, w2, b2)


if __name__ == "__main__":
    # Small, module-consistent shapes.
    B, S = 2, 8                       # batch, sequence length (num patches)
    HIDDEN, INTER = 32, 64            # hidden_size, intermediate_size
    NUM_HEADS = 4                     # head_dim = 8
    NUM_LAYERS = 2

    key = jax.random.PRNGKey(0)
    kx, kp = jax.random.split(key)
    x = jax.random.normal(kx, (B, S, HIDDEN), jnp.float32)
    params = init_encoder_params(kp, NUM_LAYERS, HIDDEN, INTER)

    out = encoder_forward(x, params, NUM_HEADS)
    out = jax.block_until_ready(out)
    assert out.shape == (B, S, HIDDEN) and out.dtype == jnp.float32
    print("KERNEL_OK")
</pallas_src>

<mosaic_0001>
module attributes {stable_mosaic.version = 11 : i64} {
  func.func @encoder_kernel(%arg0: i32, %arg1: i32, %arg2: memref<1x8x32xf32, #tpu.memory_space<vmem>>, %arg3: memref<1x1x32xf32, #tpu.memory_space<vmem>>, %arg4: memref<1x1x32xf32, #tpu.memory_space<vmem>>, %arg5: memref<1x32x96xbf16, #tpu.memory_space<vmem>>, %arg6: memref<1x1x96xf32, #tpu.memory_space<vmem>>, %arg7: memref<1x32x32xbf16, #tpu.memory_space<vmem>>, %arg8: memref<1x1x32xf32, #tpu.memory_space<vmem>>, %arg9: memref<1x1x32xf32, #tpu.memory_space<vmem>>, %arg10: memref<1x1x32xf32, #tpu.memory_space<vmem>>, %arg11: memref<1x32x64xbf16, #tpu.memory_space<vmem>>, %arg12: memref<1x1x64xf32, #tpu.memory_space<vmem>>, %arg13: memref<1x64x32xbf16, #tpu.memory_space<vmem>>, %arg14: memref<1x1x32xf32, #tpu.memory_space<vmem>>, %arg15: memref<1x8x32xf32, #tpu.memory_space<vmem>>, %arg16: memref<8x32xf32, #tpu.memory_space<vmem>>) attributes {dimension_semantics = [#tpu.dimension_semantics<parallel>, #tpu.dimension_semantics<arbitrary>], iteration_bounds = array<i64: 2, 2>, scalar_prefetch = 0 : i64, scratch_operands = 1 : i64, tpu.core_type = #tpu.core_type<tc>, window_params = [{transform_indices = @transform_0, window_bounds = array<i64: 1, 8, 32>}, {transform_indices = @transform_1, window_bounds = array<i64: 1, 1, 32>}, {transform_indices = @transform_2, window_bounds = array<i64: 1, 1, 32>}, {transform_indices = @transform_3, window_bounds = array<i64: 1, 32, 96>}, {transform_indices = @transform_4, window_bounds = array<i64: 1, 1, 96>}, {transform_indices = @transform_5, window_bounds = array<i64: 1, 32, 32>}, {transform_indices = @transform_6, window_bounds = array<i64: 1, 1, 32>}, {transform_indices = @transform_7, window_bounds = array<i64: 1, 1, 32>}, {transform_indices = @transform_8, window_bounds = array<i64: 1, 1, 32>}, {transform_indices = @transform_9, window_bounds = array<i64: 1, 32, 64>}, {transform_indices = @transform_10, window_bounds = array<i64: 1, 1, 64>}, {transform_indices = @transform_11, window_bounds = array<i64: 1, 64, 32>}, {transform_indices = @transform_12, window_bounds = array<i64: 1, 1, 32>}, {transform_indices = @transform_13, window_bounds = array<i64: 1, 8, 32>}]} {
    %c0_i32 = arith.constant 0 : i32
    %0 = arith.cmpi eq, %arg1, %c0_i32 : i32
    %1 = arith.extui %0 : i1 to i32
    %c0_i32_0 = arith.constant 0 : i32
    %2 = arith.cmpi ne, %1, %c0_i32_0 : i32
    scf.if %2 {
      %c0_63 = arith.constant 0 : index
      %c0_64 = arith.constant 0 : index
      %c0_65 = arith.constant 0 : index
      %136 = vector.load %arg2[%c0_63, %c0_64, %c0_65] : memref<1x8x32xf32, #tpu.memory_space<vmem>>, vector<1x8x32xf32>
      %137 = vector.shape_cast %136 : vector<1x8x32xf32> to vector<8x32xf32>
      %c0_66 = arith.constant 0 : index
      %c0_67 = arith.constant 0 : index
      %138 = vector.load %arg16[%c0_66, %c0_67] : memref<8x32xf32, #tpu.memory_space<vmem>>, vector<8x32xf32>
      tpu.vector_store %arg16[%c0_66, %c0_67], %137 {strides = array<i32>} : memref<8x32xf32, #tpu.memory_space<vmem>>, vector<8x32xf32>,
    } else {
    }
    %c0 = arith.constant 0 : index
    %c0_1 = arith.constant 0 : index
    %3 = vector.load %arg16[%c0, %c0_1] : memref<8x32xf32, #tpu.memory_space<vmem>>, vector<8x32xf32>
    %c0_2 = arith.constant 0 : index
    %c0_3 = arith.constant 0 : index
    %c0_4 = arith.constant 0 : index
    %4 = vector.load %arg3[%c0_2, %c0_3, %c0_4] : memref<1x1x32xf32, #tpu.memory_space<vmem>>, vector<1x1x32xf32>
    %5 = vector.shape_cast %4 : vector<1x1x32xf32> to vector<1x32xf32>
    %c0_5 = arith.constant 0 : index
    %c0_6 = arith.constant 0 : index
    %c0_7 = arith.constant 0 : index
    %6 = vector.load %arg4[%c0_5, %c0_6, %c0_7] : memref<1x1x32xf32, #tpu.memory_space<vmem>>, vector<1x1x32xf32>
    %7 = vector.shape_cast %6 : vector<1x1x32xf32> to vector<1x32xf32>
    %cst = arith.constant dense<0.000000e+00> : vector<8xf32>
    %8 = vector.multi_reduction <add>, %3, %cst [1] : vector<8x32xf32> to vector<8xf32>
    %9 = vector.shape_cast %8 : vector<8xf32> to vector<8x1xf32>
    %cst_8 = arith.constant 3.200000e+01 : f32
    %10 = vector.broadcast %cst_8 : f32 to vector<8x1xf32>
    %11 = arith.divf %9, %10 : vector<8x1xf32>
    %12 = vector.broadcast %11 : vector<8x1xf32> to vector<8x32xf32>
    %13 = arith.subf %3, %12 : vector<8x32xf32>
    %14 = arith.mulf %13, %13 : vector<8x32xf32>
    %cst_9 = arith.constant dense<0.000000e+00> : vector<8xf32>
    %15 = vector.multi_reduction <add>, %14, %cst_9 [1] : vector<8x32xf32> to vector<8xf32>
    %16 = vector.shape_cast %15 : vector<8xf32> to vector<8x1xf32>
    %cst_10 = arith.constant 3.200000e+01 : f32
    %17 = vector.broadcast %cst_10 : f32 to vector<8x1xf32>
    %18 = arith.divf %16, %17 : vector<8x1xf32>
    %19 = vector.broadcast %11 : vector<8x1xf32> to vector<8x32xf32>
    %20 = arith.subf %3, %19 : vector<8x32xf32>
    %cst_11 = arith.constant 9.99999974E-6 : f32
    %21 = vector.broadcast %cst_11 : f32 to vector<8x1xf32>
    %22 = arith.addf %18, %21 : vector<8x1xf32>
    %23 = math.rsqrt %22 : vector<8x1xf32>
    %24 = vector.broadcast %23 : vector<8x1xf32> to vector<8x32xf32>
    %25 = arith.mulf %20, %24 : vector<8x32xf32>
    %26 = vector.broadcast %5 : vector<1x32xf32> to vector<8x32xf32>
    %27 = arith.mulf %25, %26 : vector<8x32xf32>
    %28 = vector.broadcast %7 : vector<1x32xf32> to vector<8x32xf32>
    %29 = arith.addf %27, %28 : vector<8x32xf32>
    %30 = arith.truncf %29 : vector<8x32xf32> to vector<8x32xbf16>
    %c0_12 = arith.constant 0 : index
    %c0_13 = arith.constant 0 : index
    %c0_14 = arith.constant 0 : index
    %31 = vector.load %arg5[%c0_12, %c0_13, %c0_14] : memref<1x32x96xbf16, #tpu.memory_space<vmem>>, vector<1x32x96xbf16>
    %32 = vector.shape_cast %31 : vector<1x32x96xbf16> to vector<32x96xbf16>
    %cst_15 = arith.constant dense<0.000000e+00> : vector<8x96xf32>
    %33 = tpu.matmul %30, %32, %cst_15 {dimension_numbers = #tpu.dot_dimension_numbers<[1], [0], [0], [1], [0, 0, 1, 1], [], []>} : vector<8x32xbf16>, vector<32x96xbf16>, vector<8x96xf32> -> vector<8x96xf32>
    %c0_16 = arith.constant 0 : index
    %c0_17 = arith.constant 0 : index
    %c0_18 = arith.constant 0 : index
    %34 = vector.load %arg6[%c0_16, %c0_17, %c0_18] : memref<1x1x96xf32, #tpu.memory_space<vmem>>, vector<1x1x96xf32>
    %35 = vector.shape_cast %34 : vector<1x1x96xf32> to vector<1x96xf32>
    %36 = vector.broadcast %35 : vector<1x96xf32> to vector<8x96xf32>
    %37 = arith.addf %33, %36 : vector<8x96xf32>
    %38 = vector.extract_strided_slice %37 {offsets = [0, 0], sizes = [8, 32], strides = [1, 1]} : vector<8x96xf32> to vector<8x32xf32>
    %39 = vector.extract_strided_slice %37 {offsets = [0, 32], sizes = [8, 32], strides = [1, 1]} : vector<8x96xf32> to vector<8x32xf32>
    %40 = vector.extract_strided_slice %37 {offsets = [0, 64], sizes = [8, 32], strides = [1, 1]} : vector<8x96xf32> to vector<8x32xf32>
    %41 = vector.shape_cast %38 : vector<8x32xf32> to vector<8x4x8xf32>
    %42 = tpu.transpose %41, [1, 0, 2] : vector<8x4x8xf32> -> vector<4x8x8xf32>
    %43 = vector.shape_cast %39 : vector<8x32xf32> to vector<8x4x8xf32>
    %44 = tpu.transpose %43, [1, 0, 2] : vector<8x4x8xf32> -> vector<4x8x8xf32>
    %45 = vector.shape_cast %40 : vector<8x32xf32> to vector<8x4x8xf32>
    %46 = tpu.transpose %45, [1, 0, 2] : vector<8x4x8xf32> -> vector<4x8x8xf32>
    %47 = arith.truncf %42 : vector<4x8x8xf32> to vector<4x8x8xbf16>
    %48 = arith.truncf %44 : vector<4x8x8xf32> to vector<4x8x8xbf16>
    "tpu.trace_start"() <{level = 10 : i32, message = "hqd,hkd->hqk"}> : () -> ()
    %cst_19 = arith.constant dense<0.000000e+00> : vector<4x8x8xf32>
    %49 = tpu.matmul %47, %48, %cst_19 {dimension_numbers = #tpu.dot_dimension_numbers<[2], [2], [1], [1], [0, 0, 0, 1, 1, 1], [0], [0]>} : vector<4x8x8xbf16>, vector<4x8x8xbf16>, vector<4x8x8xf32> -> vector<4x8x8xf32>
    "tpu.trace_stop"() : () -> ()
    %cst_20 = arith.constant 0.353553385 : f32
    %50 = vector.broadcast %cst_20 : f32 to vector<4x8x8xf32>
    %51 = arith.mulf %49, %50 : vector<4x8x8xf32>
    %cst_21 = arith.constant dense<0xFF800000> : vector<4x8xf32>
    %52 = vector.multi_reduction <maximumf>, %51, %cst_21 [2] : vector<4x8x8xf32> to vector<4x8xf32>
    %53 = vector.shape_cast %52 : vector<4x8xf32> to vector<4x8x1xf32>
    %54 = vector.broadcast %53 : vector<4x8x1xf32> to vector<4x8x8xf32>
    %55 = arith.subf %51, %54 : vector<4x8x8xf32>
    %56 = math.exp %55 : vector<4x8x8xf32>
    %cst_22 = arith.constant dense<0.000000e+00> : vector<4x8xf32>
    %57 = vector.multi_reduction <add>, %56, %cst_22 [2] : vector<4x8x8xf32> to vector<4x8xf32>
    %58 = vector.shape_cast %57 : vector<4x8xf32> to vector<4x8x1xf32>
    %59 = tpu.reciprocal %58 {approx = true} : vector<4x8x1xf32> -> vector<4x8x1xf32>
    %60 = vector.broadcast %59 : vector<4x8x1xf32> to vector<4x8x8xf32>
    %61 = arith.mulf %56, %60 : vector<4x8x8xf32>
    %62 = arith.truncf %61 : vector<4x8x8xf32> to vector<4x8x8xbf16>
    %63 = arith.truncf %46 : vector<4x8x8xf32> to vector<4x8x8xbf16>
    "tpu.trace_start"() <{level = 10 : i32, message = "hqk,hkd->hqd"}> : () -> ()
    %cst_23 = arith.constant dense<0.000000e+00> : vector<4x8x8xf32>
    %64 = tpu.matmul %62, %63, %cst_23 {dimension_numbers = #tpu.dot_dimension_numbers<[2], [1], [1], [2], [0, 0, 0, 1, 1, 2], [0], [0]>} : vector<4x8x8xbf16>, vector<4x8x8xbf16>, vector<4x8x8xf32> -> vector<4x8x8xf32>
    "tpu.trace_stop"() : () -> ()
    %65 = tpu.transpose %64, [1, 0, 2] : vector<4x8x8xf32> -> vector<8x4x8xf32>
    %66 = vector.shape_cast %65 : vector<8x4x8xf32> to vector<8x32xf32>
    %67 = arith.truncf %66 : vector<8x32xf32> to vector<8x32xbf16>
    %c0_24 = arith.constant 0 : index
    %c0_25 = arith.constant 0 : index
    %c0_26 = arith.constant 0 : index
    %68 = vector.load %arg7[%c0_24, %c0_25, %c0_26] : memref<1x32x32xbf16, #tpu.memory_space<vmem>>, vector<1x32x32xbf16>
    %69 = vector.shape_cast %68 : vector<1x32x32xbf16> to vector<32x32xbf16>
    %cst_27 = arith.constant dense<0.000000e+00> : vector<8x32xf32>
    %70 = tpu.matmul %67, %69, %cst_27 {dimension_numbers = #tpu.dot_dimension_numbers<[1], [0], [0], [1], [0, 0, 1, 1], [], []>} : vector<8x32xbf16>, vector<32x32xbf16>, vector<8x32xf32> -> vector<8x32xf32>
    %c0_28 = arith.constant 0 : index
    %c0_29 = arith.constant 0 : index
    %c0_30 = arith.constant 0 : index
    %71 = vector.load %arg8[%c0_28, %c0_29, %c0_30] : memref<1x1x32xf32, #tpu.memory_space<vmem>>, vector<1x1x32xf32>
    %72 = vector.shape_cast %71 : vector<1x1x32xf32> to vector<1x32xf32>
    %73 = vector.broadcast %72 : vector<1x32xf32> to vector<8x32xf32>
    %74 = arith.addf %70, %73 : vector<8x32xf32>
    %75 = arith.addf %3, %74 : vector<8x32xf32>
    %c0_31 = arith.constant 0 : index
    %c0_32 = arith.constant 0 : index
    %c0_33 = arith.constant 0 : index
    %76 = vector.load %arg9[%c0_31, %c0_32, %c0_33] : memref<1x1x32xf32, #tpu.memory_space<vmem>>, vector<1x1x32xf32>
    %77 = vector.shape_cast %76 : vector<1x1x32xf32> to vector<1x32xf32>
    %c0_34 = arith.constant 0 : index
    %c0_35 = arith.constant 0 : index
    %c0_36 = arith.constant 0 : index
    %78 = vector.load %arg10[%c0_34, %c0_35, %c0_36] : memref<1x1x32xf32, #tpu.memory_space<vmem>>, vector<1x1x32xf32>
    %79 = vector.shape_cast %78 : vector<1x1x32xf32> to vector<1x32xf32>
    %cst_37 = arith.constant dense<0.000000e+00> : vector<8xf32>
    %80 = vector.multi_reduction <add>, %75, %cst_37 [1] : vector<8x32xf32> to vector<8xf32>
    %81 = vector.shape_cast %80 : vector<8xf32> to vector<8x1xf32>
    %cst_38 = arith.constant 3.200000e+01 : f32
    %82 = vector.broadcast %cst_38 : f32 to vector<8x1xf32>
    %83 = arith.divf %81, %82 : vector<8x1xf32>
    %84 = vector.broadcast %83 : vector<8x1xf32> to vector<8x32xf32>
    %85 = arith.subf %75, %84 : vector<8x32xf32>
    %86 = arith.mulf %85, %85 : vector<8x32xf32>
    %cst_39 = arith.constant dense<0.000000e+00> : vector<8xf32>
    %87 = vector.multi_reduction <add>, %86, %cst_39 [1] : vector<8x32xf32> to vector<8xf32>
    %88 = vector.shape_cast %87 : vector<8xf32> to vector<8x1xf32>
    %cst_40 = arith.constant 3.200000e+01 : f32
    %89 = vector.broadcast %cst_40 : f32 to vector<8x1xf32>
    %90 = arith.divf %88, %89 : vector<8x1xf32>
    %91 = vector.broadcast %83 : vector<8x1xf32> to vector<8x32xf32>
    %92 = arith.subf %75, %91 : vector<8x32xf32>
    %cst_41 = arith.constant 9.99999974E-6 : f32
    %93 = vector.broadcast %cst_41 : f32 to vector<8x1xf32>
    %94 = arith.addf %90, %93 : vector<8x1xf32>
    %95 = math.rsqrt %94 : vector<8x1xf32>
    %96 = vector.broadcast %95 : vector<8x1xf32> to vector<8x32xf32>
    %97 = arith.mulf %92, %96 : vector<8x32xf32>
    %98 = vector.broadcast %77 : vector<1x32xf32> to vector<8x32xf32>
    %99 = arith.mulf %97, %98 : vector<8x32xf32>
    %100 = vector.broadcast %79 : vector<1x32xf32> to vector<8x32xf32>
    %101 = arith.addf %99, %100 : vector<8x32xf32>
    %102 = arith.truncf %101 : vector<8x32xf32> to vector<8x32xbf16>
    %c0_42 = arith.constant 0 : index
    %c0_43 = arith.constant 0 : index
    %c0_44 = arith.constant 0 : index
    %103 = vector.load %arg11[%c0_42, %c0_43, %c0_44] : memref<1x32x64xbf16, #tpu.memory_space<vmem>>, vector<1x32x64xbf16>
    %104 = vector.shape_cast %103 : vector<1x32x64xbf16> to vector<32x64xbf16>
    %cst_45 = arith.constant dense<0.000000e+00> : vector<8x64xf32>
    %105 = tpu.matmul %102, %104, %cst_45 {dimension_numbers = #tpu.dot_dimension_numbers<[1], [0], [0], [1], [0, 0, 1, 1], [], []>} : vector<8x32xbf16>, vector<32x64xbf16>, vector<8x64xf32> -> vector<8x64xf32>
    %c0_46 = arith.constant 0 : index
    %c0_47 = arith.constant 0 : index
    %c0_48 = arith.constant 0 : index
    %106 = vector.load %arg12[%c0_46, %c0_47, %c0_48] : memref<1x1x64xf32, #tpu.memory_space<vmem>>, vector<1x1x64xf32>
    %107 = vector.shape_cast %106 : vector<1x1x64xf32> to vector<1x64xf32>
    %108 = vector.broadcast %107 : vector<1x64xf32> to vector<8x64xf32>
    %109 = arith.addf %105, %108 : vector<8x64xf32>
    %cst_49 = arith.constant 5.000000e-01 : f32
    %110 = vector.broadcast %cst_49 : f32 to vector<8x64xf32>
    %111 = arith.mulf %110, %109 : vector<8x64xf32>
    %cst_50 = arith.constant 4.471500e-02 : f32
    %112 = vector.broadcast %cst_50 : f32 to vector<8x64xf32>
    %113 = arith.mulf %112, %109 : vector<8x64xf32>
    %114 = arith.mulf %113, %109 : vector<8x64xf32>
    %115 = arith.mulf %114, %109 : vector<8x64xf32>
    %116 = arith.addf %109, %115 : vector<8x64xf32>
    %cst_51 = arith.constant 0.797884583 : f32
    %117 = vector.broadcast %cst_51 : f32 to vector<8x64xf32>
    %118 = arith.mulf %117, %116 : vector<8x64xf32>
    %119 = math.tanh %118 : vector<8x64xf32>
    %cst_52 = arith.constant 1.000000e+00 : f32
    %120 = vector.broadcast %cst_52 : f32 to vector<8x64xf32>
    %121 = arith.addf %120, %119 : vector<8x64xf32>
    %122 = arith.mulf %111, %121 : vector<8x64xf32>
    %123 = arith.truncf %122 : vector<8x64xf32> to vector<8x64xbf16>
    %c0_53 = arith.constant 0 : index
    %c0_54 = arith.constant 0 : index
    %c0_55 = arith.constant 0 : index
    %124 = vector.load %arg13[%c0_53, %c0_54, %c0_55] : memref<1x64x32xbf16, #tpu.memory_space<vmem>>, vector<1x64x32xbf16>
    %125 = vector.shape_cast %124 : vector<1x64x32xbf16> to vector<64x32xbf16>
    %cst_56 = arith.constant dense<0.000000e+00> : vector<8x32xf32>
    %126 = tpu.matmul %123, %125, %cst_56 {dimension_numbers = #tpu.dot_dimension_numbers<[1], [0], [0], [1], [0, 0, 1, 1], [], []>} : vector<8x64xbf16>, vector<64x32xbf16>, vector<8x32xf32> -> vector<8x32xf32>
    %c0_57 = arith.constant 0 : index
    %c0_58 = arith.constant 0 : index
    %c0_59 = arith.constant 0 : index
    %127 = vector.load %arg14[%c0_57, %c0_58, %c0_59] : memref<1x1x32xf32, #tpu.memory_space<vmem>>, vector<1x1x32xf32>
    %128 = vector.shape_cast %127 : vector<1x1x32xf32> to vector<1x32xf32>
    %129 = vector.broadcast %128 : vector<1x32xf32> to vector<8x32xf32>
    %130 = arith.addf %126, %129 : vector<8x32xf32>
    %131 = arith.addf %75, %130 : vector<8x32xf32>
    %c0_60 = arith.constant 0 : index
    %c0_61 = arith.constant 0 : index
    %132 = vector.load %arg16[%c0_60, %c0_61] : memref<8x32xf32, #tpu.memory_space<vmem>>, vector<8x32xf32>
    tpu.vector_store %arg16[%c0_60, %c0_61], %131 {strides = array<i32>} : memref<8x32xf32, #tpu.memory_space<vmem>>, vector<8x32xf32>,
    %c1_i32 = arith.constant 1 : i32
    %133 = arith.cmpi eq, %arg1, %c1_i32 : i32
    %134 = arith.extui %133 : i1 to i32
    %c0_i32_62 = arith.constant 0 : i32
    %135 = arith.cmpi ne, %134, %c0_i32_62 : i32
    scf.if %135 {
      %c0_63 = arith.constant 0 : index
      %c0_64 = arith.constant 0 : index
      %c0_65 = arith.constant 0 : index
      %136 = vector.load %arg15[%c0_63, %c0_64, %c0_65] : memref<1x8x32xf32, #tpu.memory_space<vmem>>, vector<1x8x32xf32>
      %137 = vector.shape_cast %136 : vector<1x8x32xf32> to vector<8x32xf32>
      %138 = vector.shape_cast %131 : vector<8x32xf32> to vector<1x8x32xf32>
      tpu.vector_store %arg15[%c0_63, %c0_64, %c0_65], %138 {strides = array<i32>} : memref<1x8x32xf32, #tpu.memory_space<vmem>>, vector<1x8x32xf32>,
    } else {
    }
    return
  }
  func.func @transform_0(%arg0: i32, %arg1: i32) -> (i32, i32, i32) {
    %c0_i32 = arith.constant 0 : i32
    %c0_i32_0 = arith.constant 0 : i32
    %c0_i32_1 = arith.constant 0 : i32
    return %arg0, %c0_i32, %c0_i32_0 : i32, i32, i32
  }
  func.func @transform_1(%arg0: i32, %arg1: i32) -> (i32, i32, i32) {
    %c0_i32 = arith.constant 0 : i32
    %c0_i32_0 = arith.constant 0 : i32
    %c0_i32_1 = arith.constant 0 : i32
    return %arg1, %c0_i32, %c0_i32_0 : i32, i32, i32
  }
  func.func @transform_2(%arg0: i32, %arg1: i32) -> (i32, i32, i32) {
    %c0_i32 = arith.constant 0 : i32
    %c0_i32_0 = arith.constant 0 : i32
    %c0_i32_1 = arith.constant 0 : i32
    return %arg1, %c0_i32, %c0_i32_0 : i32, i32, i32
  }
  func.func @transform_3(%arg0: i32, %arg1: i32) -> (i32, i32, i32) {
    %c0_i32 = arith.constant 0 : i32
    %c0_i32_0 = arith.constant 0 : i32
    %c0_i32_1 = arith.constant 0 : i32
    return %arg1, %c0_i32, %c0_i32_0 : i32, i32, i32
  }
  func.func @transform_4(%arg0: i32, %arg1: i32) -> (i32, i32, i32) {
    %c0_i32 = arith.constant 0 : i32
    %c0_i32_0 = arith.constant 0 : i32
    %c0_i32_1 = arith.constant 0 : i32
    return %arg1, %c0_i32, %c0_i32_0 : i32, i32, i32
  }
  func.func @transform_5(%arg0: i32, %arg1: i32) -> (i32, i32, i32) {
    %c0_i32 = arith.constant 0 : i32
    %c0_i32_0 = arith.constant 0 : i32
    %c0_i32_1 = arith.constant 0 : i32
    return %arg1, %c0_i32, %c0_i32_0 : i32, i32, i32
  }
  func.func @transform_6(%arg0: i32, %arg1: i32) -> (i32, i32, i32) {
    %c0_i32 = arith.constant 0 : i32
    %c0_i32_0 = arith.constant 0 : i32
    %c0_i32_1 = arith.constant 0 : i32
    return %arg1, %c0_i32, %c0_i32_0 : i32, i32, i32
  }
  func.func @transform_7(%arg0: i32, %arg1: i32) -> (i32, i32, i32) {
    %c0_i32 = arith.constant 0 : i32
    %c0_i32_0 = arith.constant 0 : i32
    %c0_i32_1 = arith.constant 0 : i32
    return %arg1, %c0_i32, %c0_i32_0 : i32, i32, i32
  }
  func.func @transform_8(%arg0: i32, %arg1: i32) -> (i32, i32, i32) {
    %c0_i32 = arith.constant 0 : i32
    %c0_i32_0 = arith.constant 0 : i32
    %c0_i32_1 = arith.constant 0 : i32
    return %arg1, %c0_i32, %c0_i32_0 : i32, i32, i32
  }
  func.func @transform_9(%arg0: i32, %arg1: i32) -> (i32, i32, i32) {
    %c0_i32 = arith.constant 0 : i32
    %c0_i32_0 = arith.constant 0 : i32
    %c0_i32_1 = arith.constant 0 : i32
    return %arg1, %c0_i32, %c0_i32_0 : i32, i32, i32
  }
  func.func @transform_10(%arg0: i32, %arg1: i32) -> (i32, i32, i32) {
    %c0_i32 = arith.constant 0 : i32
    %c0_i32_0 = arith.constant 0 : i32
    %c0_i32_1 = arith.constant 0 : i32
    return %arg1, %c0_i32, %c0_i32_0 : i32, i32, i32
  }
  func.func @transform_11(%arg0: i32, %arg1: i32) -> (i32, i32, i32) {
    %c0_i32 = arith.constant 0 : i32
    %c0_i32_0 = arith.constant 0 : i32
    %c0_i32_1 = arith.constant 0 : i32
    return %arg1, %c0_i32, %c0_i32_0 : i32, i32, i32
  }
  func.func @transform_12(%arg0: i32, %arg1: i32) -> (i32, i32, i32) {
    %c0_i32 = arith.constant 0 : i32
    %c0_i32_0 = arith.constant 0 : i32
    %c0_i32_1 = arith.constant 0 : i32
    return %arg1, %c0_i32, %c0_i32_0 : i32, i32, i32
  }
  func.func @transform_13(%arg0: i32, %arg1: i32) -> (i32, i32, i32) {
    %c0_i32 = arith.constant 0 : i32
    %c0_i32_0 = arith.constant 0 : i32
    %c0_i32_1 = arith.constant 0 : i32
    return %arg0, %c0_i32, %c0_i32_0 : i32, i32, i32
  }
}

</mosaic_0001>

<bundles_post_ra>
// kernel: tpu_custom_call.1
= control target key start
LH: loop header
LB: loop body
LE: loop exit
PB: predicated region body
PF: predicated region fallthrough
CT: control target
= control target key end

     0   :  { %s3697_s0 = inlined_call_operand.hbm [shape: f32[2,8,32], index: 0, kind: input, shape index: {}]   ;;  %s3698_s1 = inlined_call_operand.vmem [shape: f32[2,1,32], index: 1, kind: input, shape index: {}]   ;;  %s3699_s2 = inlined_call_operand.vmem [shape: f32[2,1,32], index: 2, kind: input, shape index: {}]   ;;  %s3700_s3 = inlined_call_operand.vmem [shape: bf16[2,32,96], index: 3, kind: input, shape index: {}]   ;;  %s3701_s4 = inlined_call_operand.vmem [shape: f32[2,1,96], index: 4, kind: input, shape index: {}]   ;;  %s3702_s5 = inlined_call_operand.vmem [shape: bf16[2,32,32], index: 5, kind: input, shape index: {}]   ;;  %s3703_s6 = inlined_call_operand.vmem [shape: f32[2,1,32], index: 6, kind: input, shape index: {}]   ;;  %s3704_s7 = inlined_call_operand.hbm [shape: f32[2,1,32], index: 7, kind: input, shape index: {}]   ;;  %s3705_s8 = inlined_call_operand.hbm [shape: f32[2,1,32], index: 8, kind: input, shape index: {}]   ;;  %s3706_s9 = inlined_call_operand.vmem [shape: bf16[2,32,64], index: 9, kind: input, shape index: {}]   ;;  %s3707_s10 = inlined_call_operand.hbm [shape: f32[2,1,64], index: 10, kind: input, shape index: {}]   ;;  %s3708_s11 = inlined_call_operand.vmem [shape: bf16[2,64,32], index: 11, kind: input, shape index: {}]   ;;  %s3709_s12 = inlined_call_operand.vmem [shape: f32[2,1,32], index: 12, kind: input, shape index: {}]   ;;  %s3710_s13 = inlined_call_operand.hbm [shape: f32[2,8,32], index: 13, kind: output, shape index: {}]  }
   0x1   :  { %3731 = sst [smem:[#allocation28_spill]] %s3697_s0 }
   0x2   :  { %3732 = sst [smem:[#allocation29_spill]] %s3698_s1 }
   0x3   :  { %3733 = sst [smem:[#allocation30_spill]] %s3699_s2 }
   0x4   :  { %3734 = sst [smem:[#allocation31_spill]] %s3700_s3 }
   0x5   :  { %3735 = sst [smem:[#allocation32_spill]] %s3701_s4 }
   0x6   :  { %3736 = sst [smem:[#allocation33_spill]] %s3702_s5 }
   0x7   :  { %3737 = sst [smem:[#allocation34_spill]] %s3703_s6 }
   0x8   :  { %3738 = sst [smem:[#allocation35_spill]] %s3704_s7 }
   0x9   :  { %3739 = sst [smem:[#allocation36_spill]] %s3705_s8 }
   0xa   :  { %3740 = sst [smem:[#allocation37_spill]] %s3706_s9 }
   0xb   :  { %3741 = sst [smem:[#allocation38_spill]] %s3707_s10 }
   0xc   :  { %3742 = sst [smem:[#allocation39_spill]] %s3708_s11 }
   0xd   :  { %3743 = sst [smem:[#allocation40_spill]] %s3709_s12 }
   0xe   :  { %3744 = sst [smem:[#allocation41_spill]] %s3710_s13 }
   0xf   :  { %18 = vsyncpa [#allocation4], 0 }
  0x10   :  { %20 = vsyncpa [#allocation4 + $0x1], 0 }
  0x11   :  { %21 = vsyncpa [#allocation7], 0 }
  0x12   :  { %23 = vsyncpa [#allocation7 + $0x1], 0 }
  0x13   :  { %24 = vsyncpa [#allocation10], 0 }
  0x14   :  { %26 = vsyncpa [#allocation10 + $0x1], 0 }
  0x15   :  { %27 = vsyncpa [#allocation5], 0 }
  0x16   :  { %29 = vsyncpa [#allocation5 + $0x1], 0  ;;  %s3044_s25 = smov 0   ;;  %s3046_s26 = smov 0  }
  0x17   :  { %s3048_s27 = smov 0   ;;  %s3050_s28 = smov 0  }
  0x18   :  { %s3052_s29 = smov 0   ;;  %s3054_s30 = smov 0  }
  0x19   :  { %s3056_s14 = smov 0   ;;  %s3058_s15 = smov 0  }
  0x1a   :  { %s3060_s16 = smov 0   ;;  %s3062_s17 = smov 0  }
  0x1b   :  { %s3064_s18 = smov 0  }
  0x1c LB: > { %3745 = sst [smem:[#allocation16_spill]] %s2923_s27  ;;  %s3098_s19 = sadd.s32 4294967295, %s2955_s18   ;;  %s2955_s18 = sphi %s3064_s18, %s35_s18   ;;  %s2951_s17 = sphi %s3062_s17, %s3818_s17   ;;  %s2947_s16 = sphi %s3060_s16, %s3817_s16   ;;  %s2943_s15 = sphi %s3058_s15, %s3816_s15   ;;  %s2939_s14 = sphi %s3056_s14, %s3815_s14   ;;  %s2935_s30 = sphi %s3054_s30, %s3814_s30   ;;  %s2931_s29 = sphi %s3052_s29, %s3813_s29   ;;  %s2927_s28 = sphi %s3050_s28, %s3812_s28   ;;  %s2923_s27 = sphi %s3048_s27, %s3811_s27   ;;  %s2919_s26 = sphi %s3046_s26, %s3820_s26   ;;  %s2915_s25 = sphi %s3044_s25, %s3819_s25  }
  0x1d   : > { %3746 = sst [smem:[#allocation17_spill]] %s2927_s28  ;;  %s44_s20 = sadd.s32 1, %s2947_s16 }
  0x1e   : > { %3747 = sst [smem:[#allocation18_spill]] %s2931_s29  ;;  %p3101_p0 = scmp.ge.s32.totalorder %s44_s20, 2 }
  0x1f   : > { %3748 = sst [smem:[#allocation19_spill]] %s2935_s30  ;;  %p3717_p1 = scmp.eq.s32.totalorder %s2955_s18, 0 }
  0x20   : > { %3749 = sst [smem:[#allocation20_spill]] %s2939_s14  ;;  %p3716_p2 = scmp.eq.s32.totalorder %s3098_s19, 0 }
  0x21   : > { %3750 = sst [smem:[#allocation21_spill]] %s2943_s15  ;;  %s236_s22 = sadd.s32 1, %s2923_s27 }
  0x22   : > { %3751 = sst [smem:[#allocation22_spill]] %s2947_s16  ;;  %s3822_s20 = smov (%p3101_p0, %s44_s20), 0 }
  0x23   : > { %3752 = sst [smem:[#allocation23_spill]] %s2951_s17  ;;  %p243_p3 = scmp.ne.s32.totalorder %s2923_s27, %s2919_s26 }
  0x24   : > { %s3753_s21 = scalar_select %p3101_p0, 1, 0 }
  0x25   : > { %3754 = sst [smem:[#allocation24_spill]] %s3822_s20  ;;  %p249_p4 = scmp.ne.s32.totalorder %s2919_s26, %s2915_s25 }
  0x26   : > { %s233_s23 = ssub.s32 %s2947_s16, %s3822_s20  ;;  %p245_p6 = por %p243_p3, %p3717_p1 }
  0x27   : > { %p234_p5 = scmp.eq.s32.totalorder %s233_s23, 0  ;;  %p3121_p7 = por %p249_p4, %p3716_p2 }
  0x28   : > { %p3715_p8 = scmp.lt.s32.totalorder %s2955_s18, 4  ;;  %s487_s15 = sand.u32 1, %s2955_s18  }
  0x29   : > { %s3755_s24 = scalar_select %p3121_p7, 1, 0 }
  0x2a   : > { %s3127_s13 = scalar_select %p234_p5, %s2923_s27, %s236_s22  }
  0x2b   : > { %s3131_s11 = sand.u32 1, %s2923_s27   ;;  %s3134_s12 = sshll.u32 %s2947_s16, 4 }
  0x2c   : > { %3756 = sst [smem:[#allocation25_spill]] %s3127_s13  ;;  %s490_s25 = scalar_lea.vmem [#allocation6], %s3131_s11 }
  0x2d   : > { %s497_s20 = sshll.u32 %s490_s25, 4  ;;  %s3757_s7 = sld [smem:[#allocation35_spill]]  ;;  %s3143_s20 = int_to_ptr.vmem [resolvable:$true] %s497_s20 }
  0x2e   : > { %p3147_p9 = pnand %p3715_p8, %p245_p6  ;;  %s3153_s25 = scalar_lea.sflag [#allocation7], %s487_s15 }
  0x30   : > { %s3758_s22 = scalar_select %p3147_p9, 1, 0 }
  0x31   : > { %p3159_p13 = pneg %p3147_p9 }
  0x33   : > { %s3141_s6 = scalar_lea.hbm %s3757_s7, %s3134_s12  ;;  %s2710_s27 = scalar_lea.hbm %s3757_s7, 32 }
  0x34   : > { %s2705_s16 = scalar_lea.hbm %s3141_s6, 16  ;;  %p2711_p5 = scmp.lt.u32.totalorder %s3141_s6, %s3757_s7 }
  0x35   : > { %p2706_p12 = scmp.ne.s32.totalorder %s3141_s6, %s2705_s16  ;;  %p2712_p6 = scmp.lt.u32.totalorder %s2710_s27, %s2705_s16 }
  0x36   : > { %p2714_p2 = scmp.lt.u32.totalorder %s2705_s16, %s3141_s6 }
  0x37   : > { %p2708_p3 = pnand %p3159_p13, %p2706_p12  ;;  %p2713_p8 = por %p2712_p6, %p2711_p5 }
  0x39   : > { %p2709_p4 = pneg %p2708_p3  ;;  %p2715_p1 = por %p2714_p2, %p2713_p8 }
  0x3b   : > { %p2716_p10 = pnand %p2715_p1, %p2709_p4 }
  0x3d   : > { %2719 = shalt.err (!%p2716_p10)
}
  0x3e   : > { %s2720_s15 = scalar_lea.vmem %s3143_s20, 16  ;;  %s2957_s13 = smov [#allocation6]  }
  0x3f   : > { %p2721_p12 = scmp.ne.s32.totalorder %s3143_s20, %s2720_s15  ;;  %s2725_s23 = sshll.u32 %s2957_s13, 4  ;;  %s2726_s23 = int_to_ptr.vmem [resolvable:$false] %s2725_s23 }
  0x40   : > { %s2727_s3 = scalar_lea.vmem %s2726_s23, 32  ;;  %p2728_p7 = scmp.lt.s32.totalorder %s3143_s20, %s2726_s23 }
  0x41   : > { %p2723_p3 = pnand %p2721_p12, %p3159_p13  ;;  %p2729_p0 = scmp.lt.s32.totalorder %s2727_s3, %s2720_s15 }
  0x43   : > { %p2724_p11 = pneg %p2723_p3  ;;  %p2730_p5 = por %p2729_p0, %p2728_p7 }
  0x45   : > { %p2731_p6 = pnand %p2730_p5, %p2724_p11 }
  0x47   : > { %2734 = shalt.err (!%p2731_p6)
}
  0x48   : > { %2560 = dma.hbm_to_vmem [thread:$0]  (!%p3147_p9), %s3141_s6, 16, %s3143_s20, %s3153_s25  }
  0x49   : > { %p3760_p0 = scmp.lt.s32.totalorder %s2955_s18, 5  ;;  %p3761_p1 = scmp.ge.s32.totalorder %s2955_s18, 1 }
  0x4a   : > { %s2363_s27 = sadd.s32 4294967294, %s2955_s18   ;;  %s47_s16 = sadd.s32 1, %s2951_s17 }
  0x4b   : > { %p3187_p2 = pnand %p3761_p1, %p3760_p0  ;;  %s54_s15 = sadd.s32 1, %s2935_s30 }
  0x4c   : > { %p3763_p7 = scmp.ne.s32.totalorder %s3753_s21, 0  ;;  %p61_p8 = scmp.ne.s32.totalorder %s2935_s30, %s2931_s29 }
  0x4d   : > { %s3762_s5 = scalar_select %p3187_p2, 1, 0 }
  0x4e   : > { %s3824_s16 = smov (!%p3763_p7, %s47_s16), %s2951_s17  ;;  %p67_p10 = scmp.ne.s32.totalorder %s2931_s29, %s2927_s28 }
  0x4f   : > { %p49_p11 = scmp.ge.s32.totalorder %s3824_s16, 2  ;;  %p403_p4 = scmp.eq.s32.totalorder %s3098_s19, 3 }
  0x50   : > { %p3764_p12 = scmp.eq.s32.totalorder %s2955_s18, 0  ;;  %p3766_p5 = scmp.eq.s32.totalorder %s3098_s19, 0 }
  0x51   : > { %s3826_s16 = smov (%p49_p11, %s3824_s16), 0  ;;  %p3216_p0 = por %p403_p4, %p61_p8 }
  0x52   : > { %p3204_p3 = por %p3764_p12, %p61_p8  ;;  %p3210_p6 = por %p3766_p5, %p67_p10 }
  0x53   : > { %3768 = sst [smem:[#allocation26_spill]] %s3826_s16  ;;  %p409_p1 = scmp.eq.s32.totalorder %s2363_s27, 3 }
  0x54   : > { %s3767_s20 = scalar_select %p3210_p6, 1, 0 }
  0x55   : > { %s3769_s21 = scalar_select %p3216_p0, 1, 0 }
  0x56   : > { %s51_s13 = ssub.s32 %s2951_s17, %s3826_s16  ;;  %s429_s23 = sand.u32 1, %s2935_s30  }
  0x57   : > { %p52_p7 = scmp.eq.s32.totalorder %s51_s13, 0  ;;  %p3223_p12 = por %p409_p1, %p67_p10 }
  0x58   : > { %s2366_s7 = sshll.u32 %s429_s23, 3  ;;  %s2367_s4 = sshll.u32 %s2951_s17, 7 }
  0x59   : > { %s3770_s3 = scalar_select %p3223_p12, 1, 0 }
  0x5a   : > { %s3228_s28 = scalar_select %p52_p7, %s2935_s30, %s54_s15  }
  0x5b   : > { %s3772_s0 = sld [smem:[#allocation28_spill]]  ;;  %s433_s27 = scalar_lea.vmem [#allocation3], %s2366_s7 }
  0x5c   : > { %3771 = sst [smem:[#allocation27_spill]] %s3228_s28  ;;  %s440_s16 = sshll.u32 %s433_s27, 4  ;;  %s3236_s16 = int_to_ptr.vmem [resolvable:$true] %s440_s16 }
  0x5d   : > { %p3773_p8 = scmp.lt.s32.totalorder %s2955_s18, 4  ;;  %s3775_s8 = sld [smem:[#allocation36_spill]] }
  0x5e   : > { %s507_s2 = scalar_lea.vmem [#allocation8], %s3131_s11  ;;  %s430_s7 = scalar_lea.sflag [#allocation4], %s429_s23 }
  0x5f   : > { %p3242_p10 = pnand %p3773_p8, %p3204_p3 }
  0x61   : > { %s3234_s14 = scalar_lea.hbm %s3772_s0, %s2367_s4  ;;  %s3253_s4 = sshll.u32 %s507_s2, 4  ;;  %s515_s4 = int_to_ptr.vmem [resolvable:$true] %s3253_s4 }
  0x62   : > { %s2735_s27 = scalar_lea.hbm %s3234_s14, 128  ;;  %p2737_p4 = pneg %p3242_p10 }
  0x63   : > { %s3250_s1 = scalar_lea.hbm %s3775_s8, %s3134_s12  ;;  %p2736_p11 = scmp.ne.s32.totalorder %s3234_s14, %s2735_s27 }
  0x64   : > { %s2740_s17 = scalar_lea.hbm %s3772_s0, 256  ;;  %p2741_p1 = scmp.lt.u32.totalorder %s3234_s14, %s3772_s0 }
  0x65   : > { %p2738_p3 = pnand %p2737_p4, %p2736_p11  ;;  %p2742_p7 = scmp.lt.u32.totalorder %s2740_s17, %s2735_s27 }
  0x66   : > { %p2744_p12 = scmp.lt.u32.totalorder %s2735_s27, %s3234_s14 }
  0x67   : > { %p2739_p5 = pneg %p2738_p3  ;;  %p2743_p8 = por %p2742_p7, %p2741_p1 }
  0x69   : > { %p2745_p0 = por %p2744_p12, %p2743_p8 }
  0x6b   : > { %p2746_p6 = pnand %p2745_p0, %p2739_p5 }
  0x6d   : > { %2749 = shalt.err (!%p2746_p6)
}
  0x6e   : > { %s2750_s23 = scalar_lea.vmem %s3236_s16, 128  ;;  %s2958_s28 = smov [#allocation3]  }
  0x6f   : > { %p2751_p11 = scmp.ne.s32.totalorder %s3236_s16, %s2750_s23  ;;  %s2755_s2 = sshll.u32 %s2958_s28, 4  ;;  %s2756_s2 = int_to_ptr.vmem [resolvable:$false] %s2755_s2 }
  0x70   : > { %s2757_s30 = scalar_lea.vmem %s2756_s2, 256  ;;  %p2758_p9 = scmp.lt.s32.totalorder %s3236_s16, %s2756_s2 }
  0x71   : > { %p2753_p3 = pnand %p2751_p11, %p2737_p4  ;;  %p2759_p1 = scmp.lt.s32.totalorder %s2757_s30, %s2750_s23 }
  0x73   : > { %p2754_p2 = pneg %p2753_p3  ;;  %p2760_p7 = por %p2759_p1, %p2758_p9 }
  0x75   : > { %p2761_p12 = pnand %p2760_p7, %p2754_p2 }
  0x77   : > { %2764 = shalt.err (!%p2761_p12)
}
  0x78   : > { %2557 = dma.hbm_to_vmem [thread:$0]  (!%p3242_p10), %s3234_s14, 128, %s3236_s16, %s430_s7  }
  0x79   : > { %s2765_s27 = scalar_lea.hbm %s3250_s1, 16  ;;  %s2770_s15 = scalar_lea.hbm %s3775_s8, 32 }
  0x7a   : > { %p2766_p6 = scmp.ne.s32.totalorder %s3250_s1, %s2765_s27  ;;  %p2771_p9 = scmp.lt.u32.totalorder %s3250_s1, %s3775_s8 }
  0x7b   : > { %p2772_p2 = scmp.lt.u32.totalorder %s2770_s15, %s2765_s27  ;;  %p2774_p8 = scmp.lt.u32.totalorder %s2765_s27, %s3250_s1 }
  0x7c   : > { %p2768_p0 = pnand %p2766_p6, %p3159_p13 }
  0x7d   : > { %p2773_p5 = por %p2772_p2, %p2771_p9 }
  0x7e   : > { %p2769_p4 = pneg %p2768_p0 }
  0x7f   : > { %p2775_p11 = por %p2774_p8, %p2773_p5 }
  0x81   : > { %p2776_p3 = pnand %p2775_p11, %p2769_p4 }
  0x83   : > { %2779 = shalt.err (!%p2776_p3)
}
  0x84   : > { %s2780_s14 = scalar_lea.vmem %s515_s4, 16  ;;  %s2959_s16 = smov [#allocation8]  }
  0x85   : > { %p2781_p10 = scmp.ne.s32.totalorder %s515_s4, %s2780_s14  ;;  %s2785_s7 = sshll.u32 %s2959_s16, 4  ;;  %s2786_s7 = int_to_ptr.vmem [resolvable:$false] %s2785_s7 }
  0x86   : > { %s2787_s28 = scalar_lea.vmem %s2786_s7, 32  ;;  %p2788_p12 = scmp.lt.s32.totalorder %s515_s4, %s2786_s7 }
  0x87   : > { %p2783_p1 = pnand %p2781_p10, %p3159_p13  ;;  %p2789_p6 = scmp.lt.s32.totalorder %s2787_s28, %s2780_s14 }
  0x89   : > { %p2784_p7 = pneg %p2783_p1  ;;  %p2790_p0 = por %p2789_p6, %p2788_p12 }
  0x8b   : > { %p2791_p2 = pnand %p2790_p0, %p2784_p7 }
  0x8d   : > { %2794 = shalt.err (!%p2791_p2)
}
  0x8e   : > { %p3776_p9 = scmp.ne.s32.totalorder %s3758_s22, 0  ;;  %s3777_s10 = sld [smem:[#allocation38_spill]] }
  0x8f   : > { %s532_s6 = scalar_lea.vmem [#allocation9], %s3131_s11  ;;  %s530_s15 = scalar_lea.sflag [#allocation10], %s3131_s11 }
  0x90   : > { %2563 = dma.hbm_to_vmem [thread:$0]  (!%p3776_p9), %s3250_s1, 16, %s515_s4, %s3153_s25  }
  0x91   : > { %s539_s17 = sshll.u32 %s532_s6, 4  ;;  %s540_s17 = int_to_ptr.vmem [resolvable:$true] %s539_s17 }
  0x94   : > { %s3303_s27 = scalar_lea.hbm %s3777_s10, %s3134_s12  ;;  %s2800_s1 = scalar_lea.hbm %s3777_s10, 32 }
  0x95   : > { %s2795_s13 = scalar_lea.hbm %s3303_s27, 16  ;;  %p2801_p11 = scmp.lt.u32.totalorder %s3303_s27, %s3777_s10 }
  0x96   : > { %p2796_p4 = scmp.ne.s32.totalorder %s3303_s27, %s2795_s13  ;;  %p2802_p3 = scmp.lt.u32.totalorder %s2800_s1, %s2795_s13 }
  0x97   : > { %p2804_p1 = scmp.lt.u32.totalorder %s2795_s13, %s3303_s27 }
  0x98   : > { %p2798_p5 = pnand %p2796_p4, %p3159_p13  ;;  %p2803_p10 = por %p2802_p3, %p2801_p11 }
  0x9a   : > { %p2799_p8 = pneg %p2798_p5  ;;  %p2805_p7 = por %p2804_p1, %p2803_p10 }
  0x9c   : > { %p2806_p12 = pnand %p2805_p7, %p2799_p8 }
  0x9e   : > { %2809 = shalt.err (!%p2806_p12)
}
  0x9f   : > { %s2810_s11 = scalar_lea.vmem %s540_s17, 16  ;;  %s2960_s14 = smov [#allocation9]  }
  0xa0   : > { %p2811_p6 = scmp.ne.s32.totalorder %s540_s17, %s2810_s11  ;;  %s2815_s16 = sshll.u32 %s2960_s14, 4  ;;  %s2816_s16 = int_to_ptr.vmem [resolvable:$false] %s2815_s16 }
  0xa1   : > { %s2817_s7 = scalar_lea.vmem %s2816_s16, 32  ;;  %p2818_p4 = scmp.lt.s32.totalorder %s540_s17, %s2816_s16 }
  0xa2   : > { %p2813_p0 = pnand %p2811_p6, %p3159_p13  ;;  %p2819_p5 = scmp.lt.s32.totalorder %s2817_s7, %s2810_s11 }
  0xa4   : > { %p2814_p2 = pneg %p2813_p0  ;;  %p2820_p9 = por %p2819_p5, %p2818_p4 }
  0xa6   : > { %p2821_p3 = pnand %p2820_p9, %p2814_p2 }
  0xa8   : > { %2824 = shalt.err (!%p2821_p3)
}
  0xa9   : > { %p3778_p11 = scmp.ne.s32.totalorder %s3758_s22, 0  ;;  %p3779_p8 = scmp.ne.s32.totalorder %s3762_s5, 0 }
  0xaa   : > { %s3327_s9 = sand.u32 (!%p3779_p8), 1, %s2931_s29   ;;  %p3780_p13 = scmp.ne.s32.totalorder (!%p3779_p8), %s3767_s20, 0 }
  0xab   : > { %2566 = dma.hbm_to_vmem [thread:$0]  (!%p3778_p11), %s3303_s27, 16, %s540_s17, %s530_s15  }
  0xac   : > { %562 = sbr.rel (%p3779_p8) target bundleno = 2953 (0xb89), region = 72  ;;  %s3729_s28 = sshll.u32 (!%p3779_p8), %s3327_s9, 3 }
  0xad   : > { %s565_s2 = scalar_lea.sflag (!%p3779_p8), [#allocation4], %s3327_s9  ;;  %s568_s30 = scalar_lea.vmem (!%p3779_p8), [#allocation3], %s3729_s28 }
  0xb3   : > { %2898 = dma.done.wait (%p3780_p13), %s565_s2, 128  }
  0xb4   : > { %2900 = vsyncadd (%p3780_p13), %s565_s2, 4294967168  ;;  %s573_s22 = sand.u32 1, %s3098_s19   ;;  %s3339_s5 = sand.u32 1, %s2919_s26  }
  0xb5   : > { %s574_s27 = scalar_lea.sflag [#allocation7], %s573_s22  ;;  %p3781_p9 = scmp.ne.s32.totalorder %s3755_s24, 0 }
  0xb7   : > { %2902 = dma.done.wait (%p3781_p9), %s574_s27, 32  }
  0xb8   : > { %2904 = vsyncadd (%p3781_p9), %s574_s27, 4294967264  ;;  %s590_s17 = scalar_lea.sflag [#allocation10], %s3339_s5 }
  0xb9   : > { %2906 = dma.done.wait (%p3781_p9), %s590_s17, 16  }
  0xba   : > { %2908 = vsyncadd (%p3781_p9), %s590_s17, 4294967280  ;;  %s3782_s19 = sld [smem:[#allocation20_spill]]  ;;  %s3786_s20 = sld [smem:[#allocation31_spill]] }
  0xbb   : > { %s3787_s28 = sld [smem:[#allocation33_spill]]  ;;  %s3788_s4 = sld [smem:[#allocation34_spill]] }
  0xbc   : > { %s3789_s11 = sld [smem:[#allocation37_spill]]  ;;  %s3790_s27 = sld [smem:[#allocation40_spill]] }
  0xbd   : > { %s3791_s29 = sld [smem:[#allocation39_spill]] }
  0xc0   : > { %p682_p10 = scmp.lt.s32.totalorder %s3782_s19, 1  ;;  %p2382_p1 = scmp.ne.s32.totalorder %s3782_s19, 0 }
  0xc1   : > { %v722_v0 = vld [vmem:[%s568_s30] sm:$0xff] (!%p2382_p1)  ;;  %vm723_vm0 = vcmask (!%p2382_p1), 261120  }
  0xc2   : > { %s3355_s13 = scalar_select %p682_p10, %s3782_s19, 1 }
  0xc3   : > { %721 = sbr.rel (%p2382_p1) target bundleno = 202 (0xca), region = 92  ;;  %724 = vst.msk [vmem:[#allocation2] sm:$0xff] (!%p2382_p1), %vm723_vm0, %v722_v0 }
  0xc4   : > { %s2426_s16 = sshll.u32 %s3355_s13, 4  ;;  %s703_s10 = scalar_lea.vmem %s3788_s4, %s3355_s13 }
  0xc5   : > { %s692_s23 = scalar_lea.vmem %s3786_s20, %s2426_s16  ;;  %s3376_s0 = scalar_lea.vmem %s3787_s28, %s2426_s16 }
  0xc6   : > { %s3385_s14 = scalar_lea.vmem %s3789_s11, %s2426_s16  ;;  %s2429_s7 = sshll.u32 %s3355_s13, 5 }
  0xc7   : > { %s716_s15 = scalar_lea.vmem %s3790_s27, %s3355_s13  ;;  %s3395_s6 = scalar_lea.vmem %s3791_s29, %s2429_s7 }
  0xc8   : > { %s3792_s28 = sshll.u32 %s3327_s9, 3 }
  0xc9   : > { %s3399_s25 = scalar_lea.vmem [#allocation11], %s3792_s28 }
  0xca PF: > { %v3402_v1 = vld [vmem:[#allocation2] sm:$0xff]  ;;  %vm728_vm1 = vcmask 261120   ;;  %v2961_v9 = vmov 0.0   ;;  %vm2962_vm2 = vmmov 0   ;;  %v2674_v10 = vld [vmem:[%s692_s23 + $0x8] sm:$0xff]   ;;  %s3793_s30 = sld [smem:[#allocation29_spill]]  ;;  %v839_v32 = vlaneseq }
  0xcb   : > { %v729_v2 = vsel %vm728_vm1, %v3402_v1, 0.0  ;;  %v2673_v8 = vld [vmem:[%s692_s23] sm:$0xff]   ;;  %2460 = vmatprep.subr.bf16.mxu0 %v2961_v9  ;;  %2464 = vmatprep.mubr.msk.bf16.mxu0 %vm2962_vm2, %v2961_v9  ;;  %s3795_s27 = sld [smem:[#allocation30_spill]]  ;;  %s3797_s24 = sld [smem:[#allocation32_spill]]  ;;  %v2967_v30 = vmov 1983009808  }
  0xcc   : > { %730 = vadd.xlane.f32.xlu0 %v729_v2  ;;  %2461 = vmatpush3.bf16.msra.mxu0 %v2673_v8  ;;  %s2963_s7 = smov 104   ;;  %s2964_s2 = smov 120   ;;  %v837_v31 = vunpack.c.l.s4 %v2967_v30  ;;  %v840_v34 = vshrl.u32 %v839_v32, 7  ;;  %v2968_v36 = vmov 1934713408   ;;  %vm1274_vm3 = vcmask 64512  }
  0xcd   : > { %2468 = vmatprep.subr.bf16.mxu1 %v2961_v9  ;;  %2462 = vmatprep.subr.bf16.mxu0 %v2961_v9  ;;  %s2965_s22 = smov 112   ;;  %s2966_s20 = smov 96   ;;  %v869_v37 = vunpack.c.l.s4 %v2968_v36  ;;  %vm1518_vm4 = vcmask 1043456   ;;  %vm1849_vm5 = vcmask 130048   ;;  %vm1851_vm6 = vcmask 195584  }
  0xce   : > { %2470 = vmatprep.mubr.msk.bf16.mxu1 %vm2962_vm2, %v2961_v9  ;;  %v838_v33 = vunpack.c.0.s8 %v837_v31  ;;  %s2969_s17 = smov 64   ;;  %s2971_s28 = smov 8   ;;  %vm2066_vm7 = vcmask 523264  }
  0xcf   : > { %v870_v44 = vunpack.c.0.s8 %v869_v37  ;;  %s2972_s8 = smov 24   ;;  %s3801_s4 = scalar_lea.vmem [#allocation8], %s3339_s5 }
  0xd0   : > { %2463 = vmatpush3.bf16.msra.mxu0 %v2674_v10  ;;  %s3794_s19 = scalar_lea.vmem %s3793_s30, %s3355_s13  ;;  %v3453_v40 = vsub.s32 %v838_v33, %v840_v34 }
  0xd1   : > { %2474 = vmatprep.subr.bf16.mxu0 %v2961_v9  ;;  %v2383_v15 = vld [vmem:[%s3794_s19] ss:$0 sm:$0xff]  ;;  %s3796_s23 = scalar_lea.vmem %s3795_s27, %s3355_s13  ;;  %s3798_s11 = scalar_lea.vmem %s3797_s24, %s3355_s13  ;;  %v3463_v50 = vsub.s32 %v870_v44, %v840_v34 }
  0xd2   : > { %v2384_v17 = vld [vmem:[%s3796_s23] ss:$0 sm:$0xff]  ;;  %s3804_s27 = sld [smem:[#allocation20_spill]] }
  0xd3   : > { %v2385_v21 = vld [vmem:[%s3798_s11] ss:$0 sm:$0xff] }
  0xd8   : > { %p2421_p7 = scmp.ne.s32.totalorder %s3804_s27, 1 }
 0x159   : > { %v731_v3 = vpop.xlane.xlu0 %730 }
 0x15a   : > { %v733_v4 = vmul.f32 0.03125, %v731_v3 }
 0x15c   : > { %v734_v5 = vsub.f32 %v3402_v1, %v733_v4 }
 0x15e   : > { %v735_v6 = vmul.f32 %v734_v5, %v734_v5 }
 0x160   : > { %v736_v7 = vsel %vm728_vm1, %v735_v6, 0.0 }
 0x161   : > { %737 = vadd.xlane.f32.xlu0 %v736_v7 }
 0x1ee   : > { %v738_v11 = vpop.xlane.xlu0 %737 }
 0x1ef   : > { %v739_v12 = vmul.f32 0.03125, %v738_v11 }
 0x1f1   : > { %v740_v13 = vadd.f32 1e-05, %v739_v12 }
 0x1f3   : > { %2683 = vrsqrt.f32 %v740_v13 }
 0x1fd   : > { %v2684_v14 = vpop.eup %2683 }
 0x1fe   : > { %v742_v16 = vmul.f32 %v2684_v14, %v734_v5 }
 0x200   : > { %v749_v18 = vmul.f32 %v2383_v15, %v742_v16 }
 0x202   : > { %v756_v19 = vadd.f32 %v2384_v17, %v749_v18 }
 0x204   : > { %v757_v20 = vpack.c.bf16 %v756_v19, %v756_v19 }
 0x206   : > { %2465 = vmatmul.mubr.msk.bf16.vlgmr.msra.gmra.mrb[0].mxu0 %vm728_vm1, %v757_v20 }
 0x207   : > { %2476 = vmatprep.mubr.msk.bf16.mxu0 %vm2962_vm2, %v2961_v9 }
 0x2d9   : > { %v818_v22 = vpop.f32.mrb[0].mxu0 }
 0x2da   : > { %v3434_v23 = vadd.f32 %v2385_v21, %v818_v22  ;;  %v2466_v24 = vpop.f32.mrb[1].mxu0 }
 0x2db   : > { %v821_v25 = vpop.f32.mrb[2].mxu0 }
 0x2dc   : > { %831 = vrot.lane.b32.xlu0 %v3434_v23, %s2963_s7  ;;  %825 = vrot.lane.b32.xlu1 %v3434_v23, %s2964_s2  ;;  %v2467_v26 = vpop.f32.mrb[3].mxu0 }
 0x2e0   : > { %828 = vrot.lane.b32.xlu1 %v3434_v23, %s2965_s22 }
 0x2e4   : > { %970 = vrot.lane.b32.xlu1 %v3434_v23, %s2966_s20 }
 0x34e   : > { %v3440_v27 = vpop.permute.xlu1 %825  ;;  %v3446_v29 = vpop.permute.xlu0 %831 }
 0x34f   : > { %972 = vrot.lane.b32.xlu1 %v3440_v27, %s2966_s20  ;;  %v850_v41 = vcombine.low %v3440_v27, %v3446_v29  ;;  %v851_v42 = vcombine.high %v3440_v27, %v3446_v29 }
 0x351   : > { %v858_v47 = vrot.slane %v850_v41, %v3453_v40  ;;  %v865_v48 = vrot.slane %v851_v42, %v3453_v40 }
 0x352   : > { %v3443_v28 = vpop.permute.xlu1 %828 }
 0x353   : > { %974 = vrot.lane.b32.xlu1 %v3443_v28, %s2966_s20  ;;  %v834_v38 = vcombine.low %v3434_v23, %v3443_v28  ;;  %v835_v39 = vcombine.high %v3434_v23, %v3443_v28 }
 0x355   : > { %v842_v45 = vrot.slane %v834_v38, %v3453_v40  ;;  %v849_v46 = vrot.slane %v835_v39, %v3453_v40 }
 0x356   : > { %v971_v35 = vpop.permute.xlu1 %970 }
 0x357   : > { %976 = vrot.lane.b32.xlu1 %v3446_v29, %s2966_s20  ;;  %v866_v51 = vcombine.low %v842_v45, %v858_v47  ;;  %v867_v52 = vcombine.high %v842_v45, %v858_v47  ;;  %v882_v53 = vcombine.low %v849_v46, %v865_v48  ;;  %v883_v54 = vcombine.high %v849_v46, %v865_v48 }
 0x359   : > { %v874_v60 = vrot.slane %v866_v51, %v3463_v50  ;;  %v881_v61 = vrot.slane %v867_v52, %v3463_v50  ;;  %v890_v62 = vrot.slane %v882_v53, %v3463_v50  ;;  %v897_v63 = vrot.slane %v883_v54, %v3463_v50 }
 0x35b   : > { %v902_v10 = vcombine.low %v874_v60, %v881_v61  ;;  %v2389_v11 = vcombine.high %v874_v60, %v881_v61  ;;  %v918_v12 = vcombine.low %v890_v62, %v897_v63  ;;  %v2390_v13 = vcombine.high %v890_v62, %v897_v63 }
 0x35d   : > { %v909_v22 = vrot.slane %v902_v10, %v3453_v40  ;;  %v917_v24 = vrot.slane %v2389_v11, %v3453_v40  ;;  %v925_v25 = vrot.slane %v918_v12, %v3453_v40  ;;  %v933_v26 = vrot.slane %v2390_v13, %v3453_v40 }
 0x35f   : > { %v934_v41 = vcombine.low %v909_v22, %v917_v24  ;;  %v950_v42 = vcombine.low %v925_v25, %v933_v26 }
 0x361   : > { %v958_v51 = vrot.slane %v950_v42, %v3463_v50 }
 0x3c1   : > { %v973_v43 = vpop.permute.xlu1 %972 }
 0x3c5   : > { %v975_v49 = vpop.permute.xlu1 %974 }
 0x3c6   : > { %v982_v55 = vcombine.low %v971_v35, %v975_v49  ;;  %v983_v56 = vcombine.high %v971_v35, %v975_v49  ;;  %v942_v49 = vrot.slane %v934_v41, %v3463_v50 }
 0x3c8   : > { %v990_v0 = vrot.slane %v982_v55, %v3453_v40  ;;  %v997_v2 = vrot.slane %v983_v56, %v3453_v40  ;;  %v935_v56 = vcombine.high %v909_v22, %v917_v24 }
 0x3c9   : > { %v977_v57 = vpop.permute.xlu1 %976 }
 0x3ca   : > { %v998_v58 = vcombine.low %v973_v43, %v977_v57  ;;  %v999_v59 = vcombine.high %v973_v43, %v977_v57  ;;  %v951_v57 = vcombine.high %v925_v25, %v933_v26 }
 0x3cc   : > { %v1006_v3 = vrot.slane %v998_v58, %v3453_v40  ;;  %v1013_v4 = vrot.slane %v999_v59, %v3453_v40  ;;  %v966_v58 = vcombine.low %v942_v49, %v958_v51  ;;  %v967_v59 = vcombine.high %v942_v49, %v958_v51 }
 0x3ce   : > { %v1014_v5 = vcombine.low %v990_v0, %v1006_v3  ;;  %v1015_v6 = vcombine.high %v990_v0, %v1006_v3  ;;  %v1030_v7 = vcombine.low %v997_v2, %v1013_v4  ;;  %v1031_v8 = vcombine.high %v997_v2, %v1013_v4 }
 0x3cf   : > { %v1266_v62 = vpack.c.bf16 %v966_v58, %v966_v58  ;;  %v1267_v63 = vpack.c.bf16 %v967_v59, %v967_v59  ;;  %v949_v0 = vrot.slane %v935_v56, %v3463_v50  ;;  %v965_v2 = vrot.slane %v951_v57, %v3463_v50 }
 0x3d0   : > { %v1022_v14 = vrot.slane %v1014_v5, %v3463_v50  ;;  %v1029_v15 = vrot.slane %v1015_v6, %v3463_v50  ;;  %v1038_v16 = vrot.slane %v1030_v7, %v3463_v50  ;;  %v1045_v17 = vrot.slane %v1031_v8, %v3463_v50 }
 0x3d1   : > { %v968_v5 = vcombine.low %v949_v0, %v965_v2  ;;  %v969_v6 = vcombine.high %v949_v0, %v965_v2 }
 0x3d2   : > { %v1050_v18 = vcombine.low %v1022_v14, %v1029_v15  ;;  %v2391_v19 = vcombine.high %v1022_v14, %v1029_v15  ;;  %v1066_v20 = vcombine.low %v1038_v16, %v1045_v17  ;;  %v2392_v21 = vcombine.high %v1038_v16, %v1045_v17 }
 0x3d3   : > { %v1268_v7 = vpack.c.bf16 %v968_v5, %v968_v5  ;;  %v1269_v8 = vpack.c.bf16 %v969_v6, %v969_v6 }
 0x3d4   : > { %v1057_v30 = vrot.slane %v1050_v18, %v3453_v40  ;;  %v1065_v31 = vrot.slane %v2391_v19, %v3453_v40  ;;  %v1073_v32 = vrot.slane %v1066_v20, %v3453_v40  ;;  %v1081_v33 = vrot.slane %v2392_v21, %v3453_v40 }
 0x3d6   : > { %v1082_v34 = vcombine.low %v1057_v30, %v1065_v31  ;;  %v1098_v35 = vcombine.low %v1073_v32, %v1081_v33  ;;  %v1083_v36 = vcombine.high %v1057_v30, %v1065_v31  ;;  %v1099_v37 = vcombine.high %v1073_v32, %v1081_v33 }
 0x3d8   : > { %v1090_v38 = vrot.slane %v1082_v34, %v3463_v50  ;;  %v1106_v39 = vrot.slane %v1098_v35, %v3463_v50  ;;  %v1097_v45 = vrot.slane %v1083_v36, %v3463_v50  ;;  %v1113_v46 = vrot.slane %v1099_v37, %v3463_v50 }
 0x3da   : > { %v1114_v43 = vcombine.low %v1090_v38, %v1106_v39  ;;  %v1115_v44 = vcombine.high %v1090_v38, %v1106_v39  ;;  %v1116_v54 = vcombine.low %v1097_v45, %v1113_v46  ;;  %v1117_v55 = vcombine.high %v1097_v45, %v1113_v46 }
 0x3dc   : > { %v1270_v47 = vpack.c.bf16 %v1114_v43, %v1114_v43  ;;  %v1271_v48 = vpack.c.bf16 %v1115_v44, %v1115_v44  ;;  %v1272_v60 = vpack.c.bf16 %v1116_v54, %v1116_v54  ;;  %v1273_v61 = vpack.c.bf16 %v1117_v55, %v1117_v55 }
 0x3de   : > { %v1279_v52 = vsel %vm1274_vm3, %v1270_v47, 0  ;;  %v1325_v53 = vsel %vm1274_vm3, %v1271_v48, 0  ;;  %v1371_v3 = vsel %vm1274_vm3, %v1272_v60, 0  ;;  %v1417_v4 = vsel %vm1274_vm3, %v1273_v61, 0 }
 0x3df   : > { %2469 = vmatpush3.bf16.xpose.msra.mxu1 %v1279_v52  ;;  %2475 = vmatpush3.bf16.xpose.msra.mxu0 %v1325_v53 }
 0x3e0   : > { %2480 = vmatprep.subr.bf16.mxu1 %v2961_v9  ;;  %2486 = vmatprep.subr.bf16.mxu0 %v2961_v9 }
 0x3e6   : > { %2471 = vmatmul.mubr.msk.bf16.vlgmr.msra.gmra.mrb[0].mxu1 %vm1274_vm3, %v1266_v62  ;;  %2477 = vmatmul.mubr.msk.bf16.vlgmr.msra.gmra.mrb[4].mxu0 %vm1274_vm3, %v1267_v63 }
 0x3e7   : > { %2481 = vmatpush3.bf16.xpose.msra.mxu1 %v1371_v3  ;;  %2487 = vmatpush3.bf16.xpose.msra.mxu0 %v1417_v4 }
 0x3e8   : > { %2482 = vmatprep.mubr.msk.bf16.mxu1 %vm2962_vm2, %v2961_v9  ;;  %2488 = vmatprep.mubr.msk.bf16.mxu0 %vm2962_vm2, %v2961_v9 }
 0x3e9   : > { %2492 = vmatprep.subr.bf16.mxu1 %v2961_v9  ;;  %2498 = vmatprep.subr.bf16.mxu0 %v2961_v9 }
 0x3ee   : > { %2483 = vmatmul.mubr.msk.bf16.vlgmr.msra.gmra.mrb[4].mxu1 %vm1274_vm3, %v1268_v7  ;;  %2489 = vmatmul.mubr.msk.bf16.vlgmr.msra.gmra.mrb[8].mxu0 %vm1274_vm3, %v1269_v8 }
 0x3ef   : > { %2494 = vmatprep.mubr.msk.bf16.mxu1 %vm2962_vm2, %v2961_v9  ;;  %2500 = vmatprep.mubr.msk.bf16.mxu0 %vm2962_vm2, %v2961_v9 }
 0x4b9   : > { %v1315_v10 = vpop.f32.mrb[0].mxu1  ;;  %v1361_v11 = vpop.f32.mrb[4].mxu0 }
 0x4ba   : > { %v1459_v12 = vmul.f32 0.35355338, %v1315_v10  ;;  %v1460_v13 = vmul.f32 0.35355338, %v1361_v11  ;;  %v2472_v14 = vpop.f32.mrb[1].mxu1  ;;  %v2478_v15 = vpop.f32.mrb[5].mxu0 }
 0x4bb   : > { %v1318_v16 = vpop.f32.mrb[2].mxu1  ;;  %v1364_v17 = vpop.f32.mrb[6].mxu0 }
 0x4bc   : > { %v2473_v18 = vpop.f32.mrb[3].mxu1  ;;  %v2479_v19 = vpop.f32.mrb[7].mxu0  ;;  %v1463_v20 = vsel %vm1274_vm3, %v1459_v12, -inf  ;;  %v1466_v21 = vsel %vm1274_vm3, %v1460_v13, -inf }
 0x4bd   : > { %1464 = vmax.xlane.f32.xlu1 %v1463_v20  ;;  %1467 = vmax.xlane.f32.xlu0 %v1466_v21 }
 0x4c1   : > { %v1407_v22 = vpop.f32.mrb[4].mxu1  ;;  %v1453_v24 = vpop.f32.mrb[8].mxu0 }
 0x4c2   : > { %v1461_v25 = vmul.f32 0.35355338, %v1407_v22  ;;  %v1462_v26 = vmul.f32 0.35355338, %v1453_v24  ;;  %v2484_v30 = vpop.f32.mrb[5].mxu1  ;;  %v2490_v31 = vpop.f32.mrb[9].mxu0 }
 0x4c3   : > { %v1410_v32 = vpop.f32.mrb[6].mxu1  ;;  %v1456_v33 = vpop.f32.mrb[10].mxu0 }
 0x4c4   : > { %v2485_v34 = vpop.f32.mrb[7].mxu1  ;;  %v2491_v35 = vpop.f32.mrb[11].mxu0  ;;  %v1469_v36 = vsel %vm1274_vm3, %v1461_v25, -inf  ;;  %v1472_v37 = vsel %vm1274_vm3, %v1462_v26, -inf }
 0x4c5   : > { %1470 = vmax.xlane.f32.xlu1 %v1469_v36  ;;  %1473 = vmax.xlane.f32.xlu0 %v1472_v37 }
 0x4d6   : > { %1118 = vrot.lane.b32.xlu1 %v3434_v23, %s2969_s17 }
 0x54a   : > { %v1465_v38 = vpop.xlane.xlu1 %1464  ;;  %v1468_v39 = vpop.xlane.xlu0 %1467 }
 0x54b   : > { %v1475_v41 = vsub.f32 %v1459_v12, %v1465_v38  ;;  %v1476_v42 = vsub.f32 %v1460_v13, %v1468_v39 }
 0x54d   : > { %v1479_v43 = vmul.f32 1.442695, %v1475_v41  ;;  %v1481_v44 = vmul.f32 1.442695, %v1476_v42 }
 0x54f   : > { %2685 = vpow2.f32 %v1479_v43 }
 0x550   : > { %2687 = vpow2.f32 %v1481_v44 }
 0x552   : > { %v1471_v23 = vpop.xlane.xlu1 %1470  ;;  %v1474_v51 = vpop.xlane.xlu0 %1473 }
 0x553   : > { %v1477_v49 = vsub.f32 %v1461_v25, %v1471_v23  ;;  %v1478_v52 = vsub.f32 %v1462_v26, %v1474_v51 }
 0x555   : > { %v1483_v53 = vmul.f32 1.442695, %v1477_v49  ;;  %v1485_v54 = vmul.f32 1.442695, %v1478_v52 }
 0x557   : > { %2689 = vpow2.f32 %v1483_v53 }
 0x558   : > { %2691 = vpow2.f32 %v1485_v54 }
 0x559   : > { %v3518_v45 = vpop.eup %2685 }
 0x55a   : > { %v3520_v46 = vpop.eup %2687  ;;  %v1487_v47 = vsel %vm1274_vm3, %v3518_v45, 0.0 }
 0x55b   : > { %1488 = vadd.xlane.f32.xlu1 %v1487_v47  ;;  %v1490_v48 = vsel %vm1274_vm3, %v3520_v46, 0.0 }
 0x55c   : > { %1491 = vadd.xlane.f32.xlu0 %v1490_v48 }
 0x561   : > { %v3529_v55 = vpop.eup %2689 }
 0x562   : > { %v3531_v56 = vpop.eup %2691  ;;  %v1493_v57 = vsel %vm1274_vm3, %v3529_v55, 0.0 }
 0x56c   : > { %1122 = vrot.lane.b32.xlu1 %v3443_v28, %s2969_s17  ;;  %v1496_v28 = vsel %vm1274_vm3, %v3531_v56, 0.0 }
 0x570   : > { %1124 = vrot.lane.b32.xlu1 %v3446_v29, %s2969_s17 }
 0x572   : > { %1120 = vrot.lane.b32.xlu0 %v3440_v27, %s2969_s17  ;;  %v1119_v27 = vpop.permute.xlu1 %1118 }
 0x591   : > { %1494 = vadd.xlane.f32.xlu0 %v1493_v57 }
 0x594   : > { %1497 = vadd.xlane.f32.xlu1 %v1496_v28 }
 0x5e8   : > { %v1489_v29 = vpop.xlane.xlu1 %1488 }
 0x5e9   : > { %v1492_v58 = vpop.xlane.xlu0 %1491  ;;  %2693 = vrcp.f32 %v1489_v29 }
 0x5ea   : > { %2695 = vrcp.f32 %v1492_v58 }
 0x5ec   : > { %v1123_v59 = vpop.permute.xlu1 %1122 }
 0x5ed   : > { %v1130_v60 = vcombine.low %v1119_v27, %v1123_v59  ;;  %v1131_v61 = vcombine.high %v1119_v27, %v1123_v59  ;;  %v1121_v62 = vpop.permute.xlu0 %1120 }
 0x5ef   : > { %v1138_v3 = vrot.slane %v1130_v60, %v3453_v40  ;;  %v1145_v4 = vrot.slane %v1131_v61, %v3453_v40 }
 0x5f0   : > { %v1125_v63 = vpop.permute.xlu1 %1124 }
 0x5f1   : > { %v1146_v0 = vcombine.low %v1121_v62, %v1125_v63  ;;  %v1147_v2 = vcombine.high %v1121_v62, %v1125_v63  ;;  %v2675_v62 = vld [vmem:[%s3376_s0] sm:$0xff]  }
 0x5f3   : > { %v1154_v5 = vrot.slane %v1146_v0, %v3453_v40  ;;  %v1161_v6 = vrot.slane %v1147_v2, %v3453_v40  ;;  %v2694_v34 = vpop.eup %2693 }
 0x5f4   : > { %v2696_v37 = vpop.eup %2695  ;;  %v1503_v43 = vmul.f32 %v2694_v34, %v3518_v45 }
 0x5f5   : > { %v1162_v7 = vcombine.low %v1138_v3, %v1154_v5  ;;  %v1163_v8 = vcombine.high %v1138_v3, %v1154_v5  ;;  %v1178_v10 = vcombine.low %v1145_v4, %v1161_v6  ;;  %v1179_v11 = vcombine.high %v1145_v4, %v1161_v6 }
 0x5f6   : > { %v1504_v44 = vmul.f32 %v2696_v37, %v3520_v46  ;;  %v1507_v53 = vpack.c.bf16 %v1503_v43, %v1503_v43 }
 0x5f7   : > { %v1170_v12 = vrot.slane %v1162_v7, %v3463_v50  ;;  %v1177_v13 = vrot.slane %v1163_v8, %v3463_v50  ;;  %v1186_v14 = vrot.slane %v1178_v10, %v3463_v50  ;;  %v1193_v15 = vrot.slane %v1179_v11, %v3463_v50 }
 0x5f8   : > { %v1508_v54 = vpack.c.bf16 %v1504_v44, %v1504_v44 }
 0x5f9   : > { %v1198_v16 = vcombine.low %v1170_v12, %v1177_v13  ;;  %v2393_v17 = vcombine.high %v1170_v12, %v1177_v13  ;;  %v1214_v18 = vcombine.low %v1186_v14, %v1193_v15  ;;  %v2394_v19 = vcombine.high %v1186_v14, %v1193_v15 }
 0x5fb   : > { %v1205_v20 = vrot.slane %v1198_v16, %v3453_v40  ;;  %v1213_v21 = vrot.slane %v2393_v17, %v3453_v40  ;;  %v1221_v22 = vrot.slane %v1214_v18, %v3453_v40  ;;  %v1229_v24 = vrot.slane %v2394_v19, %v3453_v40 }
 0x5fd   : > { %v1230_v25 = vcombine.low %v1205_v20, %v1213_v21  ;;  %v1231_v26 = vcombine.high %v1205_v20, %v1213_v21  ;;  %v1246_v30 = vcombine.low %v1221_v22, %v1229_v24  ;;  %v1247_v31 = vcombine.high %v1221_v22, %v1229_v24 }
 0x5ff   : > { %v1238_v32 = vrot.slane %v1230_v25, %v3463_v50  ;;  %v1245_v33 = vrot.slane %v1231_v26, %v3463_v50  ;;  %v1254_v35 = vrot.slane %v1246_v30, %v3463_v50  ;;  %v1261_v36 = vrot.slane %v1247_v31, %v3463_v50  ;;  %v2676_v31 = vld [vmem:[%s3376_s0 + $0x8] sm:$0xff]   ;;  %s2970_s0 = smov 16  }
 0x601   : > { %v1262_v38 = vcombine.low %v1238_v32, %v1254_v35  ;;  %v1263_v39 = vcombine.high %v1238_v32, %v1254_v35  ;;  %v1264_v41 = vcombine.low %v1245_v33, %v1261_v36  ;;  %v1265_v42 = vcombine.high %v1245_v33, %v1261_v36 }
 0x603   : > { %v1511_v47 = vpack.c.bf16 %v1262_v38, %v1262_v38  ;;  %v1512_v48 = vpack.c.bf16 %v1263_v39, %v1263_v39  ;;  %v1513_v51 = vpack.c.bf16 %v1264_v41, %v1264_v41  ;;  %v1514_v52 = vpack.c.bf16 %v1265_v42, %v1265_v42 }
 0x605   : > { %v1520_v23 = vsel %vm1518_vm4, %v1511_v47, 0  ;;  %v1566_v49 = vsel %vm1518_vm4, %v1512_v48, 0  ;;  %v1612_v45 = vsel %vm1518_vm4, %v1513_v51, 0  ;;  %v1658_v46 = vsel %vm1518_vm4, %v1514_v52, 0 }
 0x606   : > { %2493 = vmatpush3.bf16.msra.mxu1 %v1520_v23  ;;  %2499 = vmatpush3.bf16.msra.mxu0 %v1566_v49 }
 0x607   : > { %2504 = vmatprep.subr.bf16.mxu1 %v2961_v9  ;;  %2510 = vmatprep.subr.bf16.mxu0 %v2961_v9 }
 0x609   : > { %2495 = vmatmul.mubr.msk.bf16.vlgmr.msra.gmra.mrb[8].mxu1 %vm1274_vm3, %v1507_v53  ;;  %2501 = vmatmul.mubr.msk.bf16.vlgmr.msra.gmra.mrb[12].mxu0 %vm1274_vm3, %v1508_v54 }
 0x60a   : > { %2505 = vmatpush3.bf16.msra.mxu1 %v1612_v45  ;;  %2511 = vmatpush3.bf16.msra.mxu0 %v1658_v46 }
 0x60b   : > { %2506 = vmatprep.mubr.msk.bf16.mxu1 %vm2962_vm2, %v2961_v9  ;;  %2512 = vmatprep.mubr.msk.bf16.mxu0 %vm2962_vm2, %v2961_v9 }
 0x60c   : > { %2516 = vmatprep.subr.bf16.mxu1 %v2961_v9  ;;  %2524 = vmatprep.subr.bf16.mxu0 %v2961_v9 }
 0x61e   : > { %v1495_v57 = vpop.xlane.xlu0 %1494 }
 0x61f   : > { %2697 = vrcp.f32 %v1495_v57 }
 0x621   : > { %v1498_v28 = vpop.xlane.xlu1 %1497 }
 0x622   : > { %2699 = vrcp.f32 %v1498_v28 }
 0x629   : > { %v2698_v27 = vpop.eup %2697 }
 0x62a   : > { %v1505_v29 = vmul.f32 %v2698_v27, %v3529_v55 }
 0x62c   : > { %v2700_v58 = vpop.eup %2699  ;;  %v1509_v59 = vpack.c.bf16 %v1505_v29, %v1505_v29 }
 0x62d   : > { %v1506_v60 = vmul.f32 %v2700_v58, %v3531_v56 }
 0x62e   : > { %2507 = vmatmul.mubr.msk.bf16.vlgmr.msra.gmra.mrb[12].mxu1 %vm1274_vm3, %v1509_v59 }
 0x62f   : > { %v1510_v61 = vpack.c.bf16 %v1506_v60, %v1506_v60  ;;  %2520 = vmatprep.mubr.msk.bf16.mxu1 %vm2962_vm2, %v2961_v9  ;;  %2517 = vmatpush3.bf16.msra.mxu1 %v2675_v62 }
 0x630   : > { %2518 = vmatprep.subr.bf16.mxu1 %v2961_v9 }
 0x631   : > { %2513 = vmatmul.mubr.msk.bf16.vlgmr.msra.gmra.mrb[16].mxu0 %vm1274_vm3, %v1510_v61  ;;  %v2405_v61 = vld [vmem:[%s703_s10] ss:$0 sm:$0xff]  ;;  %s3800_s10 = scalar_lea.vmem [#allocation6], %s3339_s5 }
 0x632   : > { %2528 = vmatprep.mubr.msk.bf16.mxu0 %vm2962_vm2, %v2961_v9 }
 0x633   : > { %2519 = vmatpush3.bf16.msra.mxu1 %v2676_v31 }
 0x634   : > { %2532 = vmatprep.subr.bf16.mxu1 %v2961_v9 }
 0x6dc   : > { %v1556_v55 = vpop.f32.mrb[8].mxu1  ;;  %v1602_v63 = vpop.f32.mrb[12].mxu0 }
 0x6dd   : > { %v2496_v0 = vpop.f32.mrb[9].mxu1  ;;  %v2502_v2 = vpop.f32.mrb[13].mxu0 }
 0x6de   : > { %v1559_v56 = vpop.f32.mrb[10].mxu1  ;;  %v1605_v3 = vpop.f32.mrb[14].mxu0 }
 0x6df   : > { %v2497_v4 = vpop.f32.mrb[11].mxu1  ;;  %v2503_v5 = vpop.f32.mrb[15].mxu0 }
 0x701   : > { %v1648_v6 = vpop.f32.mrb[12].mxu1 }
 0x702   : > { %v1700_v7 = vcombine.low %v1556_v55, %v1648_v6  ;;  %v1701_v8 = vcombine.high %v1556_v55, %v1648_v6  ;;  %v2508_v10 = vpop.f32.mrb[13].mxu1 }
 0x703   : > { %v1651_v11 = vpop.f32.mrb[14].mxu1  ;;  %v2677_v10 = vld [vmem:[%s3385_s14] sm:$0xff]  }
 0x704   : > { %v2509_v12 = vpop.f32.mrb[15].mxu1  ;;  %v1694_v13 = vpop.f32.mrb[16].mxu0  ;;  %v1708_v18 = vrot.slane %v1700_v7, %v3453_v40  ;;  %v1715_v19 = vrot.slane %v1701_v8, %v3453_v40  ;;  %2525 = vmatpush3.bf16.msra.mxu0 %v2677_v10  ;;  %v2678_v11 = vld [vmem:[%s3385_s14 + $0x8] sm:$0xff]   ;;  %s3802_s14 = scalar_lea.vmem [#allocation9], %s3339_s5 }
 0x705   : > { %v1716_v14 = vcombine.low %v1602_v63, %v1694_v13  ;;  %v1717_v15 = vcombine.high %v1602_v63, %v1694_v13  ;;  %v2514_v16 = vpop.f32.mrb[17].mxu0  ;;  %2526 = vmatprep.subr.bf16.mxu0 %v2961_v9 }
 0x706   : > { %v1697_v17 = vpop.f32.mrb[18].mxu0 }
 0x707   : > { %v1724_v20 = vrot.slane %v1716_v14, %v3453_v40  ;;  %v1731_v21 = vrot.slane %v1717_v15, %v3453_v40  ;;  %v2515_v22 = vpop.f32.mrb[19].mxu0  ;;  %v2409_v15 = vld [vmem:[%s3800_s10] ss:$0 sm:$0xff] }
 0x708   : > { %2527 = vmatpush3.bf16.msra.mxu0 %v2678_v11  ;;  %v2410_v17 = vld [vmem:[%s3801_s4] ss:$0 sm:$0xff]  ;;  %v2680_v22 = vld [vmem:[%s3395_s6 + $0x8] sm:$0xff]  }
 0x709   : > { %v1732_v24 = vcombine.low %v1708_v18, %v1724_v20  ;;  %v1733_v25 = vcombine.high %v1708_v18, %v1724_v20  ;;  %v1748_v26 = vcombine.low %v1715_v19, %v1731_v21  ;;  %v1749_v30 = vcombine.high %v1715_v19, %v1731_v21  ;;  %v2679_v21 = vld [vmem:[%s3395_s6] sm:$0xff]  }
 0x70b   : > { %v1740_v32 = vrot.slane %v1732_v24, %v3463_v50  ;;  %v1747_v33 = vrot.slane %v1733_v25, %v3463_v50  ;;  %v1756_v34 = vrot.slane %v1748_v26, %v3463_v50  ;;  %v1763_v35 = vrot.slane %v1749_v30, %v3463_v50  ;;  %v2681_v24 = vld [vmem:[%s3395_s6 + $0x10] sm:$0xff]   ;;  %v2682_v25 = vld [vmem:[%s3395_s6 + $0x18] sm:$0xff]   ;;  %v2411_v26 = vld [vmem:[%s3802_s14] ss:$0 sm:$0xff] }
 0x70d   : > { %v1768_v36 = vcombine.low %v1740_v32, %v1747_v33  ;;  %v2403_v37 = vcombine.high %v1740_v32, %v1747_v33  ;;  %v1784_v38 = vcombine.low %v1756_v34, %v1763_v35  ;;  %v2404_v39 = vcombine.high %v1756_v34, %v1763_v35 }
 0x70f   : > { %v1775_v41 = vrot.slane %v1768_v36, %v3453_v40  ;;  %v1783_v42 = vrot.slane %v2403_v37, %v3453_v40  ;;  %v1791_v43 = vrot.slane %v1784_v38, %v3453_v40  ;;  %v1799_v44 = vrot.slane %v2404_v39, %v3453_v40 }
 0x711   : > { %v1801_v47 = vcombine.high %v1775_v41, %v1783_v42  ;;  %v1817_v48 = vcombine.high %v1791_v43, %v1799_v44  ;;  %v1800_v23 = vcombine.low %v1775_v41, %v1783_v42  ;;  %v1816_v49 = vcombine.low %v1791_v43, %v1799_v44 }
 0x713   : > { %v1815_v51 = vrot.slane %v1801_v47, %v3463_v50  ;;  %v1831_v52 = vrot.slane %v1817_v48, %v3463_v50  ;;  %v1808_v53 = vrot.slane %v1800_v23, %v3463_v50  ;;  %v1824_v54 = vrot.slane %v1816_v49, %v3463_v50  ;;  %v2415_v47 = vld [vmem:[%s716_s15] ss:$0 sm:$0xff] }
 0x715   : > { %v1834_v45 = vcombine.low %v1815_v51, %v1831_v52  ;;  %v1833_v46 = vcombine.high %v1808_v53, %v1824_v54  ;;  %v1835_v57 = vcombine.high %v1815_v51, %v1831_v52  ;;  %v1832_v28 = vcombine.low %v1808_v53, %v1824_v54 }
 0x717   : > { %1841 = vrot.lane.b32.xlu1 %v1834_v45, %s2970_s0  ;;  %1837 = vrot.lane.b32.xlu0 %v1833_v46, %s2971_s28 }
 0x71b   : > { %1845 = vrot.lane.b32.xlu0 %v1835_v57, %s2972_s8 }
 0x789   : > { %v1838_v40 = vpop.permute.xlu0 %1837  ;;  %v1842_v27 = vpop.permute.xlu1 %1841 }
 0x78a   : > { %v1848_v29 = vsel %vm1274_vm3, %v1832_v28, %v1838_v40 }
 0x78b   : > { %v1850_v59 = vsel %vm1849_vm5, %v1848_v29, %v1842_v27 }
 0x78d   : > { %v1846_v58 = vpop.permute.xlu0 %1845 }
 0x78e   : > { %v1852_v50 = vsel %vm1851_vm6, %v1850_v59, %v1846_v58 }
 0x78f   : > { %v1853_v60 = vpack.c.bf16 %v1852_v50, %v1852_v50 }
 0x791   : > { %2521 = vmatmul.mubr.msk.bf16.vlgmr.msra.gmra.mrb[16].mxu1 %vm728_vm1, %v1853_v60 }
 0x792   : > { %2540 = vmatprep.mubr.msk.bf16.mxu1 %vm2962_vm2, %v2961_v9  ;;  %2533 = vmatpush3.bf16.msra.mxu1 %v2679_v21 }
 0x793   : > { %2534 = vmatprep.subr.bf16.mxu1 %v2961_v9 }
 0x796   : > { %2535 = vmatpush3.bf16.msra.mxu1 %v2680_v22 }
 0x797   : > { %2536 = vmatprep.subr.bf16.mxu1 %v2961_v9 }
 0x79a   : > { %2537 = vmatpush3.bf16.msra.mxu1 %v2681_v24 }
 0x79b   : > { %2538 = vmatprep.subr.bf16.mxu1 %v2961_v9 }
 0x79e   : > { %2539 = vmatpush3.bf16.msra.mxu1 %v2682_v25 }
 0x864   : > { %v1914_v62 = vpop.f32.mrb[16].mxu1 }
 0x865   : > { %v1915_v55 = vadd.f32 %v2405_v61, %v1914_v62  ;;  %v2522_v63 = vpop.f32.mrb[17].mxu1 }
 0x866   : > { %v1917_v0 = vpop.f32.mrb[18].mxu1 }
 0x867   : > { %v1920_v2 = vadd.f32 %v1915_v55, %v3402_v1  ;;  %v2523_v56 = vpop.f32.mrb[19].mxu1 }
 0x869   : > { %v1923_v3 = vsel %vm728_vm1, %v1920_v2, 0.0 }
 0x86a   : > { %1924 = vadd.xlane.f32.xlu1 %v1923_v3 }
 0x8f7   : > { %v1925_v4 = vpop.xlane.xlu1 %1924 }
 0x8f8   : > { %v1926_v5 = vmul.f32 0.03125, %v1925_v4 }
 0x8fa   : > { %v1927_v6 = vsub.f32 %v1920_v2, %v1926_v5 }
 0x8fc   : > { %v1928_v7 = vmul.f32 %v1927_v6, %v1927_v6 }
 0x8fe   : > { %v1929_v8 = vsel %vm728_vm1, %v1928_v7, 0.0 }
 0x8ff   : > { %1930 = vadd.xlane.f32.xlu0 %v1929_v8 }
 0x98c   : > { %v1931_v1 = vpop.xlane.xlu0 %1930 }
 0x98d   : > { %v1932_v12 = vmul.f32 0.03125, %v1931_v1 }
 0x98f   : > { %v1933_v13 = vadd.f32 1e-05, %v1932_v12 }
 0x991   : > { %2701 = vrsqrt.f32 %v1933_v13 }
 0x99b   : > { %v2702_v14 = vpop.eup %2701 }
 0x99c   : > { %v1935_v16 = vmul.f32 %v2702_v14, %v1927_v6 }
 0x99e   : > { %v1942_v18 = vmul.f32 %v2409_v15, %v1935_v16 }
 0x9a0   : > { %v1949_v19 = vadd.f32 %v2410_v17, %v1942_v18 }
 0x9a2   : > { %v1950_v20 = vpack.c.bf16 %v1949_v19, %v1949_v19 }
 0x9a4   : > { %2529 = vmatmul.mubr.msk.bf16.vlgmr.msra.gmra.mrb[20].mxu0 %vm728_vm1, %v1950_v20 }
 0xa77   : > { %v2011_v30 = vpop.f32.mrb[20].mxu0 }
 0xa78   : > { %v2012_v31 = vadd.f32 %v2411_v26, %v2011_v30  ;;  %v2530_v32 = vpop.f32.mrb[21].mxu0 }
 0xa79   : > { %v2014_v33 = vpop.f32.mrb[22].mxu0 }
 0xa7a   : > { %v2018_v34 = vmul.f32 0.044715, %v2012_v31  ;;  %v2531_v35 = vpop.f32.mrb[23].mxu0  ;;  %v2017_v42 = vmul.f32 0.5, %v2012_v31 }
 0xa7c   : > { %v2019_v36 = vmul.f32 %v2018_v34, %v2012_v31 }
 0xa7e   : > { %v2020_v37 = vmul.f32 %v2019_v36, %v2012_v31 }
 0xa80   : > { %v2021_v38 = vadd.f32 %v2020_v37, %v2012_v31 }
 0xa82   : > { %v2022_v39 = vmul.f32 0.7978846, %v2021_v38 }
 0xa84   : > { %2703 = vtanh.f32 %v2022_v39 }
 0xa8e   : > { %v2704_v41 = vpop.eup %2703 }
 0xa8f   : > { %v2024_v43 = vadd.f32 1.0, %v2704_v41 }
 0xa91   : > { %v2025_v44 = vmul.f32 %v2024_v43, %v2017_v42 }
 0xa93   : > { %v2026_v9 = vpack.c.bf16 %v2025_v44, %v2025_v44 }
 0xa95   : > { %2541 = vmatmul.mubr.msk.bf16.vlgmr.msra.gmra.mrb[20].mxu1 %vm2066_vm7, %v2026_v9 }
 0xb67   : > { %2115 = sbr.rel (%p2421_p7) target bundleno = 2926 (0xb6e), region = 96 }
 0xb68   : > { %v2104_v48 = vpop.f32.mrb[20].mxu1 }
 0xb69   : > { %v2105_v23 = vadd.f32 %v2415_v47, %v2104_v48  ;;  %v2542_v49 = vpop.f32.mrb[21].mxu1 }
 0xb6a   : > { %v2107_v51 = vpop.f32.mrb[22].mxu1 }
 0xb6b   : > { %v2110_v52 = vadd.f32 %v2105_v23, %v1920_v2  ;;  %v2543_v53 = vpop.f32.mrb[23].mxu1 }
 0xb6d   : > { %2111 = vst.msk [vmem:[#allocation2] sm:$0xff] %vm728_vm1, %v2110_v52  ;;  %2116 = vst.msk [vmem:[%s3399_s25] sm:$0xff] (!%p2421_p7), %vm728_vm1, %v2110_v52 }
 0xb6e PF: > { %s3805_s23 = sld [smem:[#allocation21_spill]]  ;;  %s3806_s12 = sld [smem:[#allocation41_spill]] }
 0xb6f   : > { %s2131_s11 = sshll.u32 %s3399_s25, 4  ;;  %s2118_s7 = scalar_lea.sflag [#allocation5], %s3327_s9  ;;  %s2132_s11 = int_to_ptr.vmem [resolvable:$true] %s2131_s11 }
 0xb70   : > { %s2825_s2 = scalar_lea.vmem %s2132_s11, 128  ;;  %p3807_p6 = scmp.ne.s32.totalorder %s3769_s21, 0 }
 0xb71   : > { %p2826_p12 = scmp.ne.s32.totalorder %s2132_s11, %s2825_s2  ;;  %s2973_s22 = smov [#allocation11]  }
 0xb72   : > { %s2829_s20 = sshll.u32 %s2973_s22, 4  ;;  %s2830_s20 = int_to_ptr.vmem [resolvable:$false] %s2829_s20 }
 0xb73   : > { %p2827_p0 = pnand %p2826_p12, %p3807_p6  ;;  %s2831_s17 = scalar_lea.vmem %s2830_s20, 256 }
 0xb74   : > { %s2423_s13 = sshll.u32 %s3805_s23, 7  ;;  %p2832_p4 = scmp.lt.s32.totalorder %s2132_s11, %s2830_s20 }
 0xb75   : > { %s3639_s24 = scalar_lea.hbm %s3806_s12, %s2423_s13  ;;  %p2828_p2 = pneg %p2827_p0 }
 0xb76   : > { %p2833_p5 = scmp.lt.s32.totalorder %s2831_s17, %s2825_s2 }
 0xb78   : > { %p2834_p3 = por %p2833_p5, %p2832_p4 }
 0xb7a   : > { %p2835_p11 = pnand %p2834_p3, %p2828_p2 }
 0xb7c   : > { %2838 = shalt.err (!%p2835_p11)
}
 0xb7d   : > { %s2839_s9 = scalar_lea.hbm %s3639_s24, 128  ;;  %s2843_s28 = scalar_lea.hbm %s3806_s12, 256 }
 0xb7e   : > { %p2840_p8 = scmp.ne.s32.totalorder %s3639_s24, %s2839_s9  ;;  %p2844_p10 = scmp.lt.u32.totalorder %s3639_s24, %s3806_s12 }
 0xb7f   : > { %p2845_p1 = scmp.lt.u32.totalorder %s2843_s28, %s2839_s9  ;;  %p2847_p12 = scmp.lt.u32.totalorder %s2839_s9, %s3639_s24 }
 0xb80   : > { %p2841_p13 = pnand %p2840_p8, %p3807_p6 }
 0xb81   : > { %p2846_p7 = por %p2845_p1, %p2844_p10 }
 0xb82   : > { %p2842_p9 = pneg %p2841_p13 }
 0xb83   : > { %p2848_p0 = por %p2847_p12, %p2846_p7 }
 0xb85   : > { %p2849_p2 = pnand %p2848_p0, %p2842_p9 }
 0xb87   : > { %2852 = shalt.err (!%p2849_p2)
}
 0xb88   : > { %2552 = dma.vmem_to_hbm [thread:$0]  (%p3807_p6), %s2132_s11, 128, %s3639_s24, %s2118_s7  }
 0xb89 PF: > { %s3808_s30 = sld [smem:[#allocation17_spill]]  ;;  %p2572_p4 = scmp.ge.s32.totalorder %s2955_s18, 2 }
 0xb8a   : > { %p3809_p5 = scmp.ne.s32.totalorder %s3770_s3, 0 }
 0xb8c   : > { %p2568_p3 = pnand %p2572_p4, %p3809_p5 }
 0xb8f   : > { %s2143_s19 = sand.u32 1, %s3808_s30  }
 0xb90   : > { %s2144_s10 = scalar_lea.sflag [#allocation5], %s2143_s19 }
 0xb91   : > { %2910 = dma.done.wait (!%p2568_p3), %s2144_s10, 128  }
 0xb92   : > { %2912 = vsyncadd (!%p2568_p3), %s2144_s10, 4294967168  ;;  %s35_s18 = sadd.s32 1, %s2955_s18   ;;  %s3810_s4 = sld [smem:[#allocation16_spill]] }
 0xb93   : > { %p32_p11 = scmp.ge.s32.totalorder %s35_s18, 6   ;;  %s3811_s27 = sld [smem:[#allocation25_spill]] }
 0xb94   : > { %s3812_s28 = sld [smem:[#allocation18_spill]]  ;;  %s3813_s29 = sld [smem:[#allocation19_spill]] }
 0xb95   : > { %s3814_s30 = sld [smem:[#allocation27_spill]]  ;;  %s3815_s14 = sld [smem:[#allocation22_spill]] }
 0xb96   : > { %s3816_s15 = sld [smem:[#allocation23_spill]]  ;;  %s3817_s16 = sld [smem:[#allocation24_spill]] }
 0xb97   : > { %s3818_s17 = sld [smem:[#allocation26_spill]]  ;;  %s3819_s25 = smov %s2919_s26 }
 0xb98   : > { %s3820_s26 = smov %s3810_s4  ;;  %34 = sbr.rel (!%p32_p11) target bundleno = 28 (0x1c), region = 189 }
 0xb9f   :  { %2149 = vsyncpa [#allocation4], 1 }
 0xba0   :  { %2151 = vsyncpa [#allocation4 + $0x1], 1 }
 0xba1   :  { %2152 = vsyncpa [#allocation7], 1 }
 0xba2   :  { %2154 = vsyncpa [#allocation7 + $0x1], 1 }
 0xba3   :  { %2155 = vsyncpa [#allocation10], 1 }
 0xba4   :  { %2157 = vsyncpa [#allocation10 + $0x1], 1 }
 0xba5   :  { %2158 = vsyncpa [#allocation5], 1 }
 0xba6   :  { %2160 = vsyncpa [#allocation5 + $0x1], 1 }

</bundles_post_ra>
